<compile_context>
chip_gen: v6e
topology: v6e:2x2x1
jax: 0.10.0
libtpu: 0.0.40
codegen_flags: <defaults>
</compile_context>

<pallas_src>
import functools
import math

import jax
import jax.numpy as jnp
from jax.experimental import pallas as pl
from jax.experimental.pallas import tpu as pltpu


# ---------------------------------------------------------------------------
# Static helpers (run at trace time)
# ---------------------------------------------------------------------------
def _pick_tile(dim, target, align):
    """Largest tile <= target that divides dim, preferring `align`-multiples."""
    if dim <= target:
        return dim
    fallback = 0
    for t in range(target, 0, -1):
        if dim % t == 0:
            if t % align == 0:
                return t
            if fallback == 0:
                fallback = t
    return fallback if fallback else dim


def _heads_per_group(num_heads, head_dim):
    """Largest head-group dividing num_heads with group width <= 128 lanes
    (dh=64 -> pairs of heads -> 128-wide MXU outputs and unmasked stores)."""
    best = 1
    for g in range(1, num_heads + 1):
        if num_heads % g == 0 and g * head_dim <= 128:
            best = g
    return best


def _pad_rows(x, mult):
    m = x.shape[0]
    pad = (-m) % mult
    if pad:
        x = jnp.pad(x, ((0, pad), (0, 0)))
    return x, pad


def _gelu_tanh(y):
    # tanh-approximated GELU (see TODO(synk) above); exp/tanh run on the EUP slot.
    return 0.5 * y * (1.0 + jnp.tanh(0.7978845608028654 * (y + 0.044715 * y * y * y)))


# ---------------------------------------------------------------------------
# Pallas kernels
# ---------------------------------------------------------------------------
def dense_kernel(x_ref, w_ref, b_ref, o_ref, acc_ref, *, activation):
    """Tiled y = x @ w + b with fused activation. k (reduction) is the last grid axis."""
    @pl.when(pl.program_id(2) == 0)
    def _():
        acc_ref[...] = jnp.zeros_like(acc_ref)

    acc_ref[...] += jnp.dot(x_ref[...], w_ref[...], preferred_element_type=jnp.float32)

    @pl.when(pl.program_id(2) == pl.num_programs(2) - 1)
    def _():
        y = acc_ref[...] + b_ref[...]
        if activation == "gelu":
            y = _gelu_tanh(y)
        o_ref[...] = y.astype(o_ref.dtype)


def dense_add_ln_kernel(x_ref, w_ref, b_ref, res_ref, g_ref, bt_ref, o_ref, acc_ref, *, eps):
    """Tiled y = LayerNorm(x @ w + b + residual). Full N (= hidden) per block so LN row
    statistics are available in the epilogue. Residual arrives in bf16, upcast here."""
    @pl.when(pl.program_id(1) == 0)
    def _():
        acc_ref[...] = jnp.zeros_like(acc_ref)

    acc_ref[...] += jnp.dot(x_ref[...], w_ref[...], preferred_element_type=jnp.float32)

    @pl.when(pl.program_id(1) == pl.num_programs(1) - 1)
    def _():
        y = acc_ref[...] + b_ref[...] + res_ref[...].astype(jnp.float32)
        mean = jnp.mean(y, axis=-1, keepdims=True)
        var = jnp.mean((y - mean) ** 2, axis=-1, keepdims=True)
        yn = (y - mean) * jax.lax.rsqrt(var + eps)
        o_ref[...] = (yn * g_ref[...] + bt_ref[...]).astype(o_ref.dtype)


def emb_ln_kernel(word_ref, pos_ref, g_ref, b_ref, o_ref, *, eps):
    """Fused embedding add (word + (position+token_type)) + LayerNorm, per batch."""
    x = word_ref[...].astype(jnp.float32) + pos_ref[...].astype(jnp.float32)
    mean = jnp.mean(x, axis=-1, keepdims=True)
    var = jnp.mean((x - mean) ** 2, axis=-1, keepdims=True)
    y = (x - mean) * jax.lax.rsqrt(var + eps)
    o_ref[...] = (y * g_ref[...] + b_ref[...]).astype(o_ref.dtype)


def attention_kernel(q_ref, k_ref, v_ref, mask_ref, o_ref, *,
                     num_heads, head_dim, scale, heads_per_group, k_base, v_base):
    """One (batch, q-tile) per grid step.  Heads processed in lane-width-128 groups and
    stored directly into the output block (no global concat, no head transposes)."""
    mask = mask_ref[0]                                   # (1, S) additive f32 mask
    dh = head_dim
    gw = heads_per_group * dh
    for g in range(num_heads // heads_per_group):        # static unroll over head groups
        parts = []
        for j in range(heads_per_group):
            h = g * heads_per_group + j
            q = q_ref[:, h * dh:(h + 1) * dh]                          # (tq, dh) bf16
            k = k_ref[:, k_base + h * dh:k_base + (h + 1) * dh]        # (S,  dh) bf16
            v = v_ref[:, v_base + h * dh:v_base + (h + 1) * dh]        # (S,  dh) bf16

            # QK^T (bf16 MXU operands, f32 accumulation)
            s = jax.lax.dot_general(q, k, (((1,), (1,)), ((), ())),
                                    preferred_element_type=jnp.float32)   # (tq, S)
            s = s * scale + mask
            s = s - jnp.max(s, axis=-1, keepdims=True)    # stable softmax, f32
            p = jnp.exp(s)
            denom = jnp.sum(p, axis=-1, keepdims=True)
            p = p * pl.reciprocal(denom, approx=True)     # EUP reciprocal

            parts.append(jnp.dot(p.astype(jnp.bfloat16), v,
                                 preferred_element_type=jnp.float32))     # (tq, dh)
        blk = parts[0] if heads_per_group == 1 else jnp.concatenate(parts, axis=-1)
        o_ref[:, g * gw:(g + 1) * gw] = blk.astype(o_ref.dtype)          # lane-dense store


# ---------------------------------------------------------------------------
# Pallas-call wrappers
# ---------------------------------------------------------------------------
def dense(x, w, b, activation="none", *, tm=512, tn=512, tk=512):
    """Tiled GEMM, bf16 in / bf16 out, f32 accumulation, fused bias + activation."""
    x, pad = _pad_rows(x, 8)
    M, K = x.shape
    N = w.shape[1]
    tm = _pick_tile(M, tm, 8)
    tn = _pick_tile(N, tn, 128)
    tk = _pick_tile(K, tk, 128)
    grid = (M // tm, N // tn, K // tk)

    kern = functools.partial(dense_kernel, activation=activation)
    out = pl.pallas_call(
        kern,
        out_shape=jax.ShapeDtypeStruct((M, N), jnp.bfloat16),
        grid=grid,
        in_specs=[
            pl.BlockSpec((tm, tk), lambda i, j, k: (i, k)),
            pl.BlockSpec((tk, tn), lambda i, j, k: (k, j)),
            pl.BlockSpec((1, tn), lambda i, j, k: (0, j)),
        ],
        out_specs=pl.BlockSpec((tm, tn), lambda i, j, k: (i, j)),
        scratch_shapes=[pltpu.VMEM((tm, tn), jnp.float32)],
        compiler_params=pltpu.CompilerParams(
            dimension_semantics=("parallel", "parallel", "arbitrary")),
    )(x.astype(jnp.bfloat16),              # no-op: activations are already bf16
      w.astype(jnp.bfloat16),              # no-op: weights pre-converted at init
      b.reshape(1, N).astype(jnp.float32))
    return out[:M - pad] if pad else out


def dense_add_ln(x, w, b, residual, gamma, beta, eps=1e-12, *, tm=256, tk=512):
    """Tiled GEMM with residual-Add + LayerNorm fused into the epilogue (full-N blocks)."""
    x, pad = _pad_rows(x, 8)
    residual, _ = _pad_rows(residual, 8)
    M, K = x.shape
    N = w.shape[1]
    tm = _pick_tile(M, tm, 8)
    tk = _pick_tile(K, tk, 128)
    grid = (M // tm, K // tk)

    kern = functools.partial(dense_add_ln_kernel, eps=eps)
    out = pl.pallas_call(
        kern,
        out_shape=jax.ShapeDtypeStruct((M, N), jnp.bfloat16),
        grid=grid,
        in_specs=[
            pl.BlockSpec((tm, tk), lambda i, k: (i, k)),
            pl.BlockSpec((tk, N), lambda i, k: (k, 0)),
            pl.BlockSpec((1, N), lambda i, k: (0, 0)),
            pl.BlockSpec((tm, N), lambda i, k: (i, 0)),
            pl.BlockSpec((1, N), lambda i, k: (0, 0)),
            pl.BlockSpec((1, N), lambda i, k: (0, 0)),
        ],
        out_specs=pl.BlockSpec((tm, N), lambda i, k: (i, 0)),
        scratch_shapes=[pltpu.VMEM((tm, N), jnp.float32)],
        compiler_params=pltpu.CompilerParams(
            dimension_semantics=("parallel", "arbitrary")),
    )(x.astype(jnp.bfloat16), w.astype(jnp.bfloat16), b.reshape(1, N).astype(jnp.float32),
      residual.astype(jnp.bfloat16),
      gamma.reshape(1, N).astype(jnp.float32), beta.reshape(1, N).astype(jnp.float32))
    return out[:M - pad] if pad else out


def embed_layernorm(word_rows, pos_plus_type, gamma, beta, B, S, eps=1e-12):
    """Fused embedding add + LayerNorm, one batch per grid step, bf16 output."""
    H = word_rows.shape[1]
    kern = functools.partial(emb_ln_kernel, eps=eps)
    return pl.pallas_call(
        kern,
        out_shape=jax.ShapeDtypeStruct((B * S, H), jnp.bfloat16),
        grid=(B,),
        in_specs=[
            pl.BlockSpec((S, H), lambda b: (b, 0)),
            pl.BlockSpec((S, H), lambda b: (0, 0)),
            pl.BlockSpec((1, H), lambda b: (0, 0)),
            pl.BlockSpec((1, H), lambda b: (0, 0)),
        ],
        out_specs=pl.BlockSpec((S, H), lambda b: (b, 0)),
        compiler_params=pltpu.CompilerParams(dimension_semantics=("parallel",)),
    )(word_rows, pos_plus_type, gamma.reshape(1, H), beta.reshape(1, H))


def multihead_attention(qkv, add_mask, B, S, H, num_heads, *, tq=256):
    """qkv: (B*S, 3H) bf16 fused-QKV activation; add_mask: (B, S) additive f32 mask.
    Grid (B, S/tq), both parallel (megacore sharding even at B=1)."""
    M = B * S
    dh = H // num_heads
    scale = 1.0 / math.sqrt(dh)
    hpg = _heads_per_group(num_heads, dh)
    tq = _pick_tile(S, tq, 8)
    n_q = S // tq

    if H % 128 == 0:
        # Lane-aligned column blocks: Q (tq,H) col-block 0, K (S,H) col-block 1, V col-block 2.
        k_base, v_base = 0, 0
        q_spec = pl.BlockSpec((tq, H), lambda b, qi: (b * n_q + qi, 0))
        k_spec = pl.BlockSpec((S, H), lambda b, qi: (b, 1))
        v_spec = pl.BlockSpec((S, H), lambda b, qi: (b, 2))
    else:
        # Tiny-config fallback: full-width packed blocks keep the last block dim == array dim.
        k_base, v_base = H, 2 * H
        q_spec = pl.BlockSpec((tq, 3 * H), lambda b, qi: (b * n_q + qi, 0))
        k_spec = pl.BlockSpec((S, 3 * H), lambda b, qi: (b, 0))
        v_spec = pl.BlockSpec((S, 3 * H), lambda b, qi: (b, 0))

    mask3 = add_mask.reshape(B, 1, S)
    kern = functools.partial(attention_kernel, num_heads=num_heads, head_dim=dh,
                             scale=scale, heads_per_group=hpg,
                             k_base=k_base, v_base=v_base)
    return pl.pallas_call(
        kern,
        out_shape=jax.ShapeDtypeStruct((M, H), jnp.bfloat16),
        grid=(B, n_q),
        in_specs=[q_spec, k_spec, v_spec,
                  pl.BlockSpec((1, 1, S), lambda b, qi: (b, 0, 0))],
        out_specs=pl.BlockSpec((tq, H), lambda b, qi: (b * n_q + qi, 0)),
        compiler_params=pltpu.CompilerParams(
            dimension_semantics=("parallel", "parallel")),
    )(qkv, qkv, qkv, mask3)


# ---------------------------------------------------------------------------
# Model (glue in plain JAX, hot paths in Pallas)
# ---------------------------------------------------------------------------
def encoder_layer(x, add_mask, p, B, S, num_heads):
    H = x.shape[1]

    # Fused Q/K/V projection: one GEMM producing (M, 3H) bf16
    qkv = dense(x, p["qkv_w"], p["qkv_b"])

    # Self-attention straight from the packed layout
    ctx = multihead_attention(qkv, add_mask, B, S, H, num_heads)

    # Attention output projection + residual Add + LayerNorm (fused epilogue)
    x = dense_add_ln(ctx, p["ao_w"], p["ao_b"], x, p["ln1_g"], p["ln1_b"])

    # Feed-forward: intermediate GEMM + GELU, then output GEMM + Add + LayerNorm
    inter = dense(x, p["i_w"], p["i_b"], activation="gelu")
    x = dense_add_ln(inter, p["o_w"], p["o_b"], x, p["ln2_g"], p["ln2_b"])
    return x


def custom_bert_forward(params, input_ids, attention_mask, *, num_heads):
    B, S = input_ids.shape
    H = params["word_emb"].shape[1]

    # Embeddings: word gather in plain JAX; add + LayerNorm fused in one Pallas pass.
    word_rows = jnp.take(params["word_emb"], input_ids.reshape(-1), axis=0)        # (B*S, H) f32
    pos_plus = (params["pos_emb"][:S] + params["type_emb"][0][None, :]).astype(jnp.float32)
    x = embed_layernorm(word_rows, pos_plus, params["emb_ln_g"], params["emb_ln_b"], B, S)

    # HF extended attention mask: (1 - mask) * finfo(float32).min, additive, kept f32.
    add_mask = (1.0 - attention_mask.astype(jnp.float32)) * jnp.finfo(jnp.float32).min

    for layer_params in params["layers"]:
        x = encoder_layer(x, add_mask, layer_params, B, S, num_heads)

    hidden = x.reshape(B, S, H)
    first_token = hidden[:, 0, :].astype(jnp.float32)                              # (B, H)
    # Pooler + classifier are tiny lane-sparse GEMMs: plain XLA avoids two kernel launches.
    pooled = jnp.tanh(first_token @ params["pool_w"] + params["pool_b"])
    logits = pooled @ params["cls_w"] + params["cls_b"]
    return logits


# ---------------------------------------------------------------------------
# Deterministic parameter init (synthetic weights, BERT-style shapes)
# ---------------------------------------------------------------------------
def init_params(key, *, vocab, max_pos, type_vocab, H, I, n_blocks, num_labels):
    ks = iter(jax.random.split(key, 16 + 8 * n_blocks))

    def w(shape, scale=0.02, dtype=jnp.float32):
        return (scale * jax.random.normal(next(ks), shape)).astype(dtype)

    def zeros(shape):
        return jnp.zeros(shape, jnp.float32)

    def ones(shape):
        return jnp.ones(shape, jnp.float32)

    params = {
        "word_emb": w((vocab, H)),
        "pos_emb": w((max_pos, H)),
        "type_emb": w((type_vocab, H)),
        "emb_ln_g": ones((H,)), "emb_ln_b": zeros((H,)),
        "pool_w": w((H, H)), "pool_b": zeros((H,)),
        "cls_w": w((H, num_labels)), "cls_b": zeros((num_labels,)),
        "layers": [],
    }
    for _ in range(n_blocks):
        params["layers"].append({
            # Encoder GEMM weights stored in bf16 ONCE (MXU operand dtype) — no per-call casts.
            "qkv_w": w((H, 3 * H), dtype=jnp.bfloat16), "qkv_b": zeros((3 * H,)),
            "ao_w": w((H, H), dtype=jnp.bfloat16), "ao_b": zeros((H,)),
            "ln1_g": ones((H,)), "ln1_b": zeros((H,)),
            "i_w": w((H, I), dtype=jnp.bfloat16), "i_b": zeros((I,)),
            "o_w": w((I, H), dtype=jnp.bfloat16), "o_b": zeros((H,)),
            "ln2_g": ones((H,)), "ln2_b": zeros((H,)),
        })
    return params


# ---------------------------------------------------------------------------
if __name__ == "__main__":
    # Small, BERT-shaped config
    B, S = 2, 8
    H, NUM_HEADS, INTER = 64, 4, 128
    VOCAB, MAX_POS, TYPE_VOCAB = 100, 16, 2
    N_BLOCKS, NUM_LABELS = 2, 3

    key = jax.random.PRNGKey(0)
    k_param, k_ids = jax.random.split(key)

    params = init_params(k_param, vocab=VOCAB, max_pos=MAX_POS, type_vocab=TYPE_VOCAB,
                         H=H, I=INTER, n_blocks=N_BLOCKS, num_labels=NUM_LABELS)

    input_ids = jax.random.randint(k_ids, (B, S), 0, VOCAB, dtype=jnp.int32)
    # second sequence has its last two tokens masked out
    attention_mask = jnp.array(
        [[1, 1, 1, 1, 1, 1, 1, 1],
         [1, 1, 1, 1, 1, 1, 0, 0]], dtype=jnp.int32)

    fwd = jax.jit(functools.partial(custom_bert_forward, num_heads=NUM_HEADS))
    logits = fwd(params, input_ids, attention_mask)
    logits = jax.block_until_ready(logits)

    assert logits.shape == (B, NUM_LABELS)
    assert bool(jnp.all(jnp.isfinite(logits)))
    print("KERNEL_OK")
</pallas_src>

<mosaic_0001>
module attributes {stable_mosaic.version = 11 : i64} {
  func.func @dense_kernel(%arg0: i32, %arg1: i32, %arg2: i32, %arg3: memref<16x64xbf16, #tpu.memory_space<vmem>>, %arg4: memref<64x192xbf16, #tpu.memory_space<vmem>>, %arg5: memref<1x192xf32, #tpu.memory_space<vmem>>, %arg6: memref<16x192xbf16, #tpu.memory_space<vmem>>, %arg7: memref<16x192xf32, #tpu.memory_space<vmem>>) attributes {dimension_semantics = [#tpu.dimension_semantics<parallel>, #tpu.dimension_semantics<parallel>, #tpu.dimension_semantics<arbitrary>], iteration_bounds = array<i64: 1, 1, 1>, scalar_prefetch = 0 : i64, scratch_operands = 1 : i64, tpu.core_type = #tpu.core_type<tc>, window_params = [{transform_indices = @transform_0, window_bounds = array<i64: 16, 64>}, {transform_indices = @transform_1, window_bounds = array<i64: 64, 192>}, {transform_indices = @transform_2, window_bounds = array<i64: 1, 192>}, {transform_indices = @transform_3, window_bounds = array<i64: 16, 192>}]} {
    %c0_i32 = arith.constant 0 : i32
    %0 = arith.cmpi eq, %arg2, %c0_i32 : i32
    %1 = arith.extui %0 : i1 to i32
    %c0_i32_0 = arith.constant 0 : i32
    %2 = arith.cmpi ne, %1, %c0_i32_0 : i32
    scf.if %2 {
      %cst_10 = arith.constant 0.000000e+00 : f32
      %12 = vector.broadcast %cst_10 : f32 to vector<16x192xf32>
      %c0_11 = arith.constant 0 : index
      %c0_12 = arith.constant 0 : index
      %13 = vector.load %arg7[%c0_11, %c0_12] : memref<16x192xf32, #tpu.memory_space<vmem>>, vector<16x192xf32>
      tpu.vector_store %arg7[%c0_11, %c0_12], %12 {strides = array<i32>} : memref<16x192xf32, #tpu.memory_space<vmem>>, vector<16x192xf32>,
    } else {
    }
    %c0 = arith.constant 0 : index
    %c0_1 = arith.constant 0 : index
    %3 = vector.load %arg7[%c0, %c0_1] : memref<16x192xf32, #tpu.memory_space<vmem>>, vector<16x192xf32>
    %c0_2 = arith.constant 0 : index
    %c0_3 = arith.constant 0 : index
    %4 = vector.load %arg3[%c0_2, %c0_3] : memref<16x64xbf16, #tpu.memory_space<vmem>>, vector<16x64xbf16>
    %c0_4 = arith.constant 0 : index
    %c0_5 = arith.constant 0 : index
    %5 = vector.load %arg4[%c0_4, %c0_5] : memref<64x192xbf16, #tpu.memory_space<vmem>>, vector<64x192xbf16>
    %cst = arith.constant dense<0.000000e+00> : vector<16x192xf32>
    %6 = tpu.matmul %4, %5, %cst {dimension_numbers = #tpu.dot_dimension_numbers<[1], [0], [0], [1], [0, 0, 1, 1], [], []>} : vector<16x64xbf16>, vector<64x192xbf16>, vector<16x192xf32> -> vector<16x192xf32>
    %7 = arith.addf %3, %6 : vector<16x192xf32>
    %c0_6 = arith.constant 0 : index
    %c0_7 = arith.constant 0 : index
    %8 = vector.load %arg7[%c0_6, %c0_7] : memref<16x192xf32, #tpu.memory_space<vmem>>, vector<16x192xf32>
    tpu.vector_store %arg7[%c0_6, %c0_7], %7 {strides = array<i32>} : memref<16x192xf32, #tpu.memory_space<vmem>>, vector<16x192xf32>,
    %c0_i32_8 = arith.constant 0 : i32
    %9 = arith.cmpi eq, %arg2, %c0_i32_8 : i32
    %10 = arith.extui %9 : i1 to i32
    %c0_i32_9 = arith.constant 0 : i32
    %11 = arith.cmpi ne, %10, %c0_i32_9 : i32
    scf.if %11 {
      %c0_10 = arith.constant 0 : index
      %c0_11 = arith.constant 0 : index
      %12 = vector.load %arg7[%c0_10, %c0_11] : memref<16x192xf32, #tpu.memory_space<vmem>>, vector<16x192xf32>
      %c0_12 = arith.constant 0 : index
      %c0_13 = arith.constant 0 : index
      %13 = vector.load %arg5[%c0_12, %c0_13] : memref<1x192xf32, #tpu.memory_space<vmem>>, vector<1x192xf32>
      %14 = vector.broadcast %13 : vector<1x192xf32> to vector<16x192xf32>
      %15 = arith.addf %12, %14 : vector<16x192xf32>
      %16 = arith.truncf %15 : vector<16x192xf32> to vector<16x192xbf16>
      %c0_14 = arith.constant 0 : index
      %c0_15 = arith.constant 0 : index
      %17 = vector.load %arg6[%c0_14, %c0_15] : memref<16x192xbf16, #tpu.memory_space<vmem>>, vector<16x192xbf16>
      tpu.vector_store %arg6[%c0_14, %c0_15], %16 {strides = array<i32>} : memref<16x192xbf16, #tpu.memory_space<vmem>>, vector<16x192xbf16>,
    } else {
    }
    return
  }
  func.func @transform_0(%arg0: i32, %arg1: i32, %arg2: i32) -> (i32, i32) {
    %c0_i32 = arith.constant 0 : i32
    return %arg0, %arg2 : i32, i32
  }
  func.func @transform_1(%arg0: i32, %arg1: i32, %arg2: i32) -> (i32, i32) {
    %c0_i32 = arith.constant 0 : i32
    return %arg2, %arg1 : i32, i32
  }
  func.func @transform_2(%arg0: i32, %arg1: i32, %arg2: i32) -> (i32, i32) {
    %c0_i32 = arith.constant 0 : i32
    %c0_i32_0 = arith.constant 0 : i32
    return %c0_i32, %arg1 : i32, i32
  }
  func.func @transform_3(%arg0: i32, %arg1: i32, %arg2: i32) -> (i32, i32) {
    %c0_i32 = arith.constant 0 : i32
    return %arg0, %arg1 : i32, i32
  }
}

module attributes {stable_mosaic.version = 11 : i64} {
  func.func @emb_ln_kernel(%arg0: i32, %arg1: memref<8x64xf32, #tpu.memory_space<vmem>>, %arg2: memref<8x64xf32, #tpu.memory_space<vmem>>, %arg3: memref<1x64xf32, #tpu.memory_space<vmem>>, %arg4: memref<1x64xf32, #tpu.memory_space<vmem>>, %arg5: memref<8x64xbf16, #tpu.memory_space<vmem>>) attributes {dimension_semantics = [#tpu.dimension_semantics<parallel>], iteration_bounds = array<i64: 2>, scalar_prefetch = 0 : i64, scratch_operands = 0 : i64, tpu.core_type = #tpu.core_type<tc>, window_params = [{transform_indices = @transform_0, window_bounds = array<i64: 8, 64>}, {pipeline_mode = #tpu.pipeline_mode<synchronous>, transform_indices = @transform_1, window_bounds = array<i64: 8, 64>}, {pipeline_mode = #tpu.pipeline_mode<synchronous>, transform_indices = @transform_2, window_bounds = array<i64: 1, 64>}, {pipeline_mode = #tpu.pipeline_mode<synchronous>, transform_indices = @transform_3, window_bounds = array<i64: 1, 64>}, {transform_indices = @transform_4, window_bounds = array<i64: 8, 64>}]} {
    %c0 = arith.constant 0 : index
    %c0_0 = arith.constant 0 : index
    %0 = vector.load %arg1[%c0, %c0_0] : memref<8x64xf32, #tpu.memory_space<vmem>>, vector<8x64xf32>
    %c0_1 = arith.constant 0 : index
    %c0_2 = arith.constant 0 : index
    %1 = vector.load %arg2[%c0_1, %c0_2] : memref<8x64xf32, #tpu.memory_space<vmem>>, vector<8x64xf32>
    %2 = arith.addf %0, %1 : vector<8x64xf32>
    %cst = arith.constant dense<0.000000e+00> : vector<8xf32>
    %3 = vector.multi_reduction <add>, %2, %cst [1] : vector<8x64xf32> to vector<8xf32>
    %4 = vector.shape_cast %3 : vector<8xf32> to vector<8x1xf32>
    %cst_3 = arith.constant 6.400000e+01 : f32
    %5 = vector.broadcast %cst_3 : f32 to vector<8x1xf32>
    %6 = arith.divf %4, %5 : vector<8x1xf32>
    %7 = vector.broadcast %6 : vector<8x1xf32> to vector<8x64xf32>
    %8 = arith.subf %2, %7 : vector<8x64xf32>
    %9 = arith.mulf %8, %8 : vector<8x64xf32>
    %cst_4 = arith.constant dense<0.000000e+00> : vector<8xf32>
    %10 = vector.multi_reduction <add>, %9, %cst_4 [1] : vector<8x64xf32> to vector<8xf32>
    %11 = vector.shape_cast %10 : vector<8xf32> to vector<8x1xf32>
    %cst_5 = arith.constant 6.400000e+01 : f32
    %12 = vector.broadcast %cst_5 : f32 to vector<8x1xf32>
    %13 = arith.divf %11, %12 : vector<8x1xf32>
    %14 = vector.broadcast %6 : vector<8x1xf32> to vector<8x64xf32>
    %15 = arith.subf %2, %14 : vector<8x64xf32>
    %cst_6 = arith.constant 9.99999996E-13 : f32
    %16 = vector.broadcast %cst_6 : f32 to vector<8x1xf32>
    %17 = arith.addf %13, %16 : vector<8x1xf32>
    %18 = math.rsqrt %17 : vector<8x1xf32>
    %19 = vector.broadcast %18 : vector<8x1xf32> to vector<8x64xf32>
    %20 = arith.mulf %15, %19 : vector<8x64xf32>
    %c0_7 = arith.constant 0 : index
    %c0_8 = arith.constant 0 : index
    %21 = vector.load %arg3[%c0_7, %c0_8] : memref<1x64xf32, #tpu.memory_space<vmem>>, vector<1x64xf32>
    %22 = vector.broadcast %21 : vector<1x64xf32> to vector<8x64xf32>
    %23 = arith.mulf %20, %22 : vector<8x64xf32>
    %c0_9 = arith.constant 0 : index
    %c0_10 = arith.constant 0 : index
    %24 = vector.load %arg4[%c0_9, %c0_10] : memref<1x64xf32, #tpu.memory_space<vmem>>, vector<1x64xf32>
    %25 = vector.broadcast %24 : vector<1x64xf32> to vector<8x64xf32>
    %26 = arith.addf %23, %25 : vector<8x64xf32>
    %27 = arith.truncf %26 : vector<8x64xf32> to vector<8x64xbf16>
    %c0_11 = arith.constant 0 : index
    %c0_12 = arith.constant 0 : index
    %28 = vector.load %arg5[%c0_11, %c0_12] : memref<8x64xbf16, #tpu.memory_space<vmem>>, vector<8x64xbf16>
    tpu.vector_store %arg5[%c0_11, %c0_12], %27 {strides = array<i32>} : memref<8x64xbf16, #tpu.memory_space<vmem>>, vector<8x64xbf16>,
    return
  }
  func.func @transform_0(%arg0: i32) -> (i32, i32) {
    %c0_i32 = arith.constant 0 : i32
    %c0_i32_0 = arith.constant 0 : i32
    return %arg0, %c0_i32 : i32, i32
  }
  func.func @transform_1(%arg0: i32) -> (i32, i32) {
    %c0_i32 = arith.constant 0 : i32
    %c0_i32_0 = arith.constant 0 : i32
    %c0_i32_1 = arith.constant 0 : i32
    return %c0_i32, %c0_i32_0 : i32, i32
  }
  func.func @transform_2(%arg0: i32) -> (i32, i32) {
    %c0_i32 = arith.constant 0 : i32
    %c0_i32_0 = arith.constant 0 : i32
    %c0_i32_1 = arith.constant 0 : i32
    return %c0_i32, %c0_i32_0 : i32, i32
  }
  func.func @transform_3(%arg0: i32) -> (i32, i32) {
    %c0_i32 = arith.constant 0 : i32
    %c0_i32_0 = arith.constant 0 : i32
    %c0_i32_1 = arith.constant 0 : i32
    return %c0_i32, %c0_i32_0 : i32, i32
  }
  func.func @transform_4(%arg0: i32) -> (i32, i32) {
    %c0_i32 = arith.constant 0 : i32
    %c0_i32_0 = arith.constant 0 : i32
    return %arg0, %c0_i32 : i32, i32
  }
}

module attributes {stable_mosaic.version = 11 : i64} {
  func.func @attention_kernel(%arg0: i32, %arg1: i32, %arg2: memref<8x192xbf16, #tpu.memory_space<vmem>>, %arg3: memref<8x192xbf16, #tpu.memory_space<vmem>>, %arg4: memref<8x192xbf16, #tpu.memory_space<vmem>>, %arg5: memref<1x1x8xf32, #tpu.memory_space<vmem>>, %arg6: memref<8x64xbf16, #tpu.memory_space<vmem>>) attributes {dimension_semantics = [#tpu.dimension_semantics<parallel>, #tpu.dimension_semantics<parallel>], iteration_bounds = array<i64: 2, 1>, scalar_prefetch = 0 : i64, scratch_operands = 0 : i64, tpu.core_type = #tpu.core_type<tc>, window_params = [{transform_indices = @transform_0, window_bounds = array<i64: 8, 192>}, {transform_indices = @transform_1, window_bounds = array<i64: 8, 192>}, {transform_indices = @transform_2, window_bounds = array<i64: 8, 192>}, {transform_indices = @transform_3, window_bounds = array<i64: 1, 1, 8>}, {transform_indices = @transform_4, window_bounds = array<i64: 8, 64>}]} {
    %c0 = arith.constant 0 : index
    %c0_0 = arith.constant 0 : index
    %c0_1 = arith.constant 0 : index
    %0 = vector.load %arg5[%c0, %c0_0, %c0_1] : memref<1x1x8xf32, #tpu.memory_space<vmem>>, vector<1x1x8xf32>
    %1 = vector.shape_cast %0 : vector<1x1x8xf32> to vector<1x8xf32>
    %c0_2 = arith.constant 0 : index
    %c0_3 = arith.constant 0 : index
    %2 = vector.load %arg2[%c0_2, %c0_3] : memref<8x192xbf16, #tpu.memory_space<vmem>>, vector<8x16xbf16>
    %c0_4 = arith.constant 0 : index
    %c64 = arith.constant 64 : index
    %3 = vector.load %arg3[%c0_4, %c64] : memref<8x192xbf16, #tpu.memory_space<vmem>>, vector<8x16xbf16>
    %c0_5 = arith.constant 0 : index
    %c128 = arith.constant 128 : index
    %4 = vector.load %arg4[%c0_5, %c128] : memref<8x192xbf16, #tpu.memory_space<vmem>>, vector<8x16xbf16>
    %cst = arith.constant dense<0.000000e+00> : vector<8x8xf32>
    %5 = tpu.matmul %2, %3, %cst {dimension_numbers = #tpu.dot_dimension_numbers<[1], [1], [0], [0], [0, 0, 1, 0], [], []>} : vector<8x16xbf16>, vector<8x16xbf16>, vector<8x8xf32> -> vector<8x8xf32>
    %cst_6 = arith.constant 2.500000e-01 : f32
    %6 = vector.broadcast %cst_6 : f32 to vector<8x8xf32>
    %7 = arith.mulf %5, %6 : vector<8x8xf32>
    %8 = vector.broadcast %1 : vector<1x8xf32> to vector<8x8xf32>
    %9 = arith.addf %7, %8 : vector<8x8xf32>
    %cst_7 = arith.constant dense<0xFF800000> : vector<8xf32>
    %10 = vector.multi_reduction <maximumf>, %9, %cst_7 [1] : vector<8x8xf32> to vector<8xf32>
    %11 = vector.shape_cast %10 : vector<8xf32> to vector<8x1xf32>
    %12 = vector.broadcast %11 : vector<8x1xf32> to vector<8x8xf32>
    %13 = arith.subf %9, %12 : vector<8x8xf32>
    %14 = math.exp %13 : vector<8x8xf32>
    %cst_8 = arith.constant dense<0.000000e+00> : vector<8xf32>
    %15 = vector.multi_reduction <add>, %14, %cst_8 [1] : vector<8x8xf32> to vector<8xf32>
    %16 = vector.shape_cast %15 : vector<8xf32> to vector<8x1xf32>
    %17 = tpu.reciprocal %16 {approx = true} : vector<8x1xf32> -> vector<8x1xf32>
    %18 = vector.broadcast %17 : vector<8x1xf32> to vector<8x8xf32>
    %19 = arith.mulf %14, %18 : vector<8x8xf32>
    %20 = arith.truncf %19 : vector<8x8xf32> to vector<8x8xbf16>
    %cst_9 = arith.constant dense<0.000000e+00> : vector<8x16xf32>
    %21 = tpu.matmul %20, %4, %cst_9 {dimension_numbers = #tpu.dot_dimension_numbers<[1], [0], [0], [1], [0, 0, 1, 1], [], []>} : vector<8x8xbf16>, vector<8x16xbf16>, vector<8x16xf32> -> vector<8x16xf32>
    %c0_10 = arith.constant 0 : index
    %c16 = arith.constant 16 : index
    %22 = vector.load %arg2[%c0_10, %c16] : memref<8x192xbf16, #tpu.memory_space<vmem>>, vector<8x16xbf16>
    %c0_11 = arith.constant 0 : index
    %c80 = arith.constant 80 : index
    %23 = vector.load %arg3[%c0_11, %c80] : memref<8x192xbf16, #tpu.memory_space<vmem>>, vector<8x16xbf16>
    %c0_12 = arith.constant 0 : index
    %c144 = arith.constant 144 : index
    %24 = vector.load %arg4[%c0_12, %c144] : memref<8x192xbf16, #tpu.memory_space<vmem>>, vector<8x16xbf16>
    %cst_13 = arith.constant dense<0.000000e+00> : vector<8x8xf32>
    %25 = tpu.matmul %22, %23, %cst_13 {dimension_numbers = #tpu.dot_dimension_numbers<[1], [1], [0], [0], [0, 0, 1, 0], [], []>} : vector<8x16xbf16>, vector<8x16xbf16>, vector<8x8xf32> -> vector<8x8xf32>
    %cst_14 = arith.constant 2.500000e-01 : f32
    %26 = vector.broadcast %cst_14 : f32 to vector<8x8xf32>
    %27 = arith.mulf %25, %26 : vector<8x8xf32>
    %28 = vector.broadcast %1 : vector<1x8xf32> to vector<8x8xf32>
    %29 = arith.addf %27, %28 : vector<8x8xf32>
    %cst_15 = arith.constant dense<0xFF800000> : vector<8xf32>
    %30 = vector.multi_reduction <maximumf>, %29, %cst_15 [1] : vector<8x8xf32> to vector<8xf32>
    %31 = vector.shape_cast %30 : vector<8xf32> to vector<8x1xf32>
    %32 = vector.broadcast %31 : vector<8x1xf32> to vector<8x8xf32>
    %33 = arith.subf %29, %32 : vector<8x8xf32>
    %34 = math.exp %33 : vector<8x8xf32>
    %cst_16 = arith.constant dense<0.000000e+00> : vector<8xf32>
    %35 = vector.multi_reduction <add>, %34, %cst_16 [1] : vector<8x8xf32> to vector<8xf32>
    %36 = vector.shape_cast %35 : vector<8xf32> to vector<8x1xf32>
    %37 = tpu.reciprocal %36 {approx = true} : vector<8x1xf32> -> vector<8x1xf32>
    %38 = vector.broadcast %37 : vector<8x1xf32> to vector<8x8xf32>
    %39 = arith.mulf %34, %38 : vector<8x8xf32>
    %40 = arith.truncf %39 : vector<8x8xf32> to vector<8x8xbf16>
    %cst_17 = arith.constant dense<0.000000e+00> : vector<8x16xf32>
    %41 = tpu.matmul %40, %24, %cst_17 {dimension_numbers = #tpu.dot_dimension_numbers<[1], [0], [0], [1], [0, 0, 1, 1], [], []>} : vector<8x8xbf16>, vector<8x16xbf16>, vector<8x16xf32> -> vector<8x16xf32>
    %c0_18 = arith.constant 0 : index
    %c32 = arith.constant 32 : index
    %42 = vector.load %arg2[%c0_18, %c32] : memref<8x192xbf16, #tpu.memory_space<vmem>>, vector<8x16xbf16>
    %c0_19 = arith.constant 0 : index
    %c96 = arith.constant 96 : index
    %43 = vector.load %arg3[%c0_19, %c96] : memref<8x192xbf16, #tpu.memory_space<vmem>>, vector<8x16xbf16>
    %c0_20 = arith.constant 0 : index
    %c160 = arith.constant 160 : index
    %44 = vector.load %arg4[%c0_20, %c160] : memref<8x192xbf16, #tpu.memory_space<vmem>>, vector<8x16xbf16>
    %cst_21 = arith.constant dense<0.000000e+00> : vector<8x8xf32>
    %45 = tpu.matmul %42, %43, %cst_21 {dimension_numbers = #tpu.dot_dimension_numbers<[1], [1], [0], [0], [0, 0, 1, 0], [], []>} : vector<8x16xbf16>, vector<8x16xbf16>, vector<8x8xf32> -> vector<8x8xf32>
    %cst_22 = arith.constant 2.500000e-01 : f32
    %46 = vector.broadcast %cst_22 : f32 to vector<8x8xf32>
    %47 = arith.mulf %45, %46 : vector<8x8xf32>
    %48 = vector.broadcast %1 : vector<1x8xf32> to vector<8x8xf32>
    %49 = arith.addf %47, %48 : vector<8x8xf32>
    %cst_23 = arith.constant dense<0xFF800000> : vector<8xf32>
    %50 = vector.multi_reduction <maximumf>, %49, %cst_23 [1] : vector<8x8xf32> to vector<8xf32>
    %51 = vector.shape_cast %50 : vector<8xf32> to vector<8x1xf32>
    %52 = vector.broadcast %51 : vector<8x1xf32> to vector<8x8xf32>
    %53 = arith.subf %49, %52 : vector<8x8xf32>
    %54 = math.exp %53 : vector<8x8xf32>
    %cst_24 = arith.constant dense<0.000000e+00> : vector<8xf32>
    %55 = vector.multi_reduction <add>, %54, %cst_24 [1] : vector<8x8xf32> to vector<8xf32>
    %56 = vector.shape_cast %55 : vector<8xf32> to vector<8x1xf32>
    %57 = tpu.reciprocal %56 {approx = true} : vector<8x1xf32> -> vector<8x1xf32>
    %58 = vector.broadcast %57 : vector<8x1xf32> to vector<8x8xf32>
    %59 = arith.mulf %54, %58 : vector<8x8xf32>
    %60 = arith.truncf %59 : vector<8x8xf32> to vector<8x8xbf16>
    %cst_25 = arith.constant dense<0.000000e+00> : vector<8x16xf32>
    %61 = tpu.matmul %60, %44, %cst_25 {dimension_numbers = #tpu.dot_dimension_numbers<[1], [0], [0], [1], [0, 0, 1, 1], [], []>} : vector<8x8xbf16>, vector<8x16xbf16>, vector<8x16xf32> -> vector<8x16xf32>
    %c0_26 = arith.constant 0 : index
    %c48 = arith.constant 48 : index
    %62 = vector.load %arg2[%c0_26, %c48] : memref<8x192xbf16, #tpu.memory_space<vmem>>, vector<8x16xbf16>
    %c0_27 = arith.constant 0 : index
    %c112 = arith.constant 112 : index
    %63 = vector.load %arg3[%c0_27, %c112] : memref<8x192xbf16, #tpu.memory_space<vmem>>, vector<8x16xbf16>
    %c0_28 = arith.constant 0 : index
    %c176 = arith.constant 176 : index
    %64 = vector.load %arg4[%c0_28, %c176] : memref<8x192xbf16, #tpu.memory_space<vmem>>, vector<8x16xbf16>
    %cst_29 = arith.constant dense<0.000000e+00> : vector<8x8xf32>
    %65 = tpu.matmul %62, %63, %cst_29 {dimension_numbers = #tpu.dot_dimension_numbers<[1], [1], [0], [0], [0, 0, 1, 0], [], []>} : vector<8x16xbf16>, vector<8x16xbf16>, vector<8x8xf32> -> vector<8x8xf32>
    %cst_30 = arith.constant 2.500000e-01 : f32
    %66 = vector.broadcast %cst_30 : f32 to vector<8x8xf32>
    %67 = arith.mulf %65, %66 : vector<8x8xf32>
    %68 = vector.broadcast %1 : vector<1x8xf32> to vector<8x8xf32>
    %69 = arith.addf %67, %68 : vector<8x8xf32>
    %cst_31 = arith.constant dense<0xFF800000> : vector<8xf32>
    %70 = vector.multi_reduction <maximumf>, %69, %cst_31 [1] : vector<8x8xf32> to vector<8xf32>
    %71 = vector.shape_cast %70 : vector<8xf32> to vector<8x1xf32>
    %72 = vector.broadcast %71 : vector<8x1xf32> to vector<8x8xf32>
    %73 = arith.subf %69, %72 : vector<8x8xf32>
    %74 = math.exp %73 : vector<8x8xf32>
    %cst_32 = arith.constant dense<0.000000e+00> : vector<8xf32>
    %75 = vector.multi_reduction <add>, %74, %cst_32 [1] : vector<8x8xf32> to vector<8xf32>
    %76 = vector.shape_cast %75 : vector<8xf32> to vector<8x1xf32>
    %77 = tpu.reciprocal %76 {approx = true} : vector<8x1xf32> -> vector<8x1xf32>
    %78 = vector.broadcast %77 : vector<8x1xf32> to vector<8x8xf32>
    %79 = arith.mulf %74, %78 : vector<8x8xf32>
    %80 = arith.truncf %79 : vector<8x8xf32> to vector<8x8xbf16>
    %cst_33 = arith.constant dense<0.000000e+00> : vector<8x16xf32>
    %81 = tpu.matmul %80, %64, %cst_33 {dimension_numbers = #tpu.dot_dimension_numbers<[1], [0], [0], [1], [0, 0, 1, 1], [], []>} : vector<8x8xbf16>, vector<8x16xbf16>, vector<8x16xf32> -> vector<8x16xf32>
    %82 = tpu.concatenate %21, %41, %61, %81 in 1 : vector<8x16xf32>, vector<8x16xf32>, vector<8x16xf32>, vector<8x16xf32> -> vector<8x64xf32>
    %83 = arith.truncf %82 : vector<8x64xf32> to vector<8x64xbf16>
    %c0_34 = arith.constant 0 : index
    %c0_35 = arith.constant 0 : index
    %84 = vector.load %arg6[%c0_34, %c0_35] : memref<8x64xbf16, #tpu.memory_space<vmem>>, vector<8x64xbf16>
    tpu.vector_store %arg6[%c0_34, %c0_35], %83 {strides = array<i32>} : memref<8x64xbf16, #tpu.memory_space<vmem>>, vector<8x64xbf16>,
    return
  }
  func.func @transform_0(%arg0: i32, %arg1: i32) -> (i32, i32) {
    %c1_i32 = arith.constant 1 : i32
    %0 = arith.muli %arg0, %c1_i32 : i32
    %1 = arith.addi %0, %arg1 : i32
    %c0_i32 = arith.constant 0 : i32
    %c0_i32_0 = arith.constant 0 : i32
    return %1, %c0_i32 : i32, i32
  }
  func.func @transform_1(%arg0: i32, %arg1: i32) -> (i32, i32) {
    %c0_i32 = arith.constant 0 : i32
    %c0_i32_0 = arith.constant 0 : i32
    return %arg0, %c0_i32 : i32, i32
  }
  func.func @transform_2(%arg0: i32, %arg1: i32) -> (i32, i32) {
    %c0_i32 = arith.constant 0 : i32
    %c0_i32_0 = arith.constant 0 : i32
    return %arg0, %c0_i32 : i32, i32
  }
  func.func @transform_3(%arg0: i32, %arg1: i32) -> (i32, i32, i32) {
    %c0_i32 = arith.constant 0 : i32
    %c0_i32_0 = arith.constant 0 : i32
    %c0_i32_1 = arith.constant 0 : i32
    return %arg0, %c0_i32, %c0_i32_0 : i32, i32, i32
  }
  func.func @transform_4(%arg0: i32, %arg1: i32) -> (i32, i32) {
    %c1_i32 = arith.constant 1 : i32
    %0 = arith.muli %arg0, %c1_i32 : i32
    %1 = arith.addi %0, %arg1 : i32
    %c0_i32 = arith.constant 0 : i32
    %c0_i32_0 = arith.constant 0 : i32
    return %1, %c0_i32 : i32, i32
  }
}

module attributes {stable_mosaic.version = 11 : i64} {
  func.func @dense_add_ln_kernel(%arg0: i32, %arg1: i32, %arg2: memref<16x64xbf16, #tpu.memory_space<vmem>>, %arg3: memref<64x64xbf16, #tpu.memory_space<vmem>>, %arg4: memref<1x64xf32, #tpu.memory_space<vmem>>, %arg5: memref<16x64xbf16, #tpu.memory_space<vmem>>, %arg6: memref<1x64xf32, #tpu.memory_space<vmem>>, %arg7: memref<1x64xf32, #tpu.memory_space<vmem>>, %arg8: memref<16x64xbf16, #tpu.memory_space<vmem>>, %arg9: memref<16x64xf32, #tpu.memory_space<vmem>>) attributes {dimension_semantics = [#tpu.dimension_semantics<parallel>, #tpu.dimension_semantics<arbitrary>], iteration_bounds = array<i64: 1, 1>, scalar_prefetch = 0 : i64, scratch_operands = 1 : i64, tpu.core_type = #tpu.core_type<tc>, window_params = [{transform_indices = @transform_0, window_bounds = array<i64: 16, 64>}, {transform_indices = @transform_1, window_bounds = array<i64: 64, 64>}, {pipeline_mode = #tpu.pipeline_mode<synchronous>, transform_indices = @transform_2, window_bounds = array<i64: 1, 64>}, {transform_indices = @transform_3, window_bounds = array<i64: 16, 64>}, {pipeline_mode = #tpu.pipeline_mode<synchronous>, transform_indices = @transform_4, window_bounds = array<i64: 1, 64>}, {pipeline_mode = #tpu.pipeline_mode<synchronous>, transform_indices = @transform_5, window_bounds = array<i64: 1, 64>}, {transform_indices = @transform_6, window_bounds = array<i64: 16, 64>}]} {
    %c0_i32 = arith.constant 0 : i32
    %0 = arith.cmpi eq, %arg1, %c0_i32 : i32
    %1 = arith.extui %0 : i1 to i32
    %c0_i32_0 = arith.constant 0 : i32
    %2 = arith.cmpi ne, %1, %c0_i32_0 : i32
    scf.if %2 {
      %cst_10 = arith.constant 0.000000e+00 : f32
      %12 = vector.broadcast %cst_10 : f32 to vector<16x64xf32>
      %c0_11 = arith.constant 0 : index
      %c0_12 = arith.constant 0 : index
      %13 = vector.load %arg9[%c0_11, %c0_12] : memref<16x64xf32, #tpu.memory_space<vmem>>, vector<16x64xf32>
      tpu.vector_store %arg9[%c0_11, %c0_12], %12 {strides = array<i32>} : memref<16x64xf32, #tpu.memory_space<vmem>>, vector<16x64xf32>,
    } else {
    }
    %c0 = arith.constant 0 : index
    %c0_1 = arith.constant 0 : index
    %3 = vector.load %arg9[%c0, %c0_1] : memref<16x64xf32, #tpu.memory_space<vmem>>, vector<16x64xf32>
    %c0_2 = arith.constant 0 : index
    %c0_3 = arith.constant 0 : index
    %4 = vector.load %arg2[%c0_2, %c0_3] : memref<16x64xbf16, #tpu.memory_space<vmem>>, vector<16x64xbf16>
    %c0_4 = arith.constant 0 : index
    %c0_5 = arith.constant 0 : index
    %5 = vector.load %arg3[%c0_4, %c0_5] : memref<64x64xbf16, #tpu.memory_space<vmem>>, vector<64x64xbf16>
    %cst = arith.constant dense<0.000000e+00> : vector<16x64xf32>
    %6 = tpu.matmul %4, %5, %cst {dimension_numbers = #tpu.dot_dimension_numbers<[1], [0], [0], [1], [0, 0, 1, 1], [], []>} : vector<16x64xbf16>, vector<64x64xbf16>, vector<16x64xf32> -> vector<16x64xf32>
    %7 = arith.addf %3, %6 : vector<16x64xf32>
    %c0_6 = arith.constant 0 : index
    %c0_7 = arith.constant 0 : index
    %8 = vector.load %arg9[%c0_6, %c0_7] : memref<16x64xf32, #tpu.memory_space<vmem>>, vector<16x64xf32>
    tpu.vector_store %arg9[%c0_6, %c0_7], %7 {strides = array<i32>} : memref<16x64xf32, #tpu.memory_space<vmem>>, vector<16x64xf32>,
    %c0_i32_8 = arith.constant 0 : i32
    %9 = arith.cmpi eq, %arg1, %c0_i32_8 : i32
    %10 = arith.extui %9 : i1 to i32
    %c0_i32_9 = arith.constant 0 : i32
    %11 = arith.cmpi ne, %10, %c0_i32_9 : i32
    scf.if %11 {
      %c0_10 = arith.constant 0 : index
      %c0_11 = arith.constant 0 : index
      %12 = vector.load %arg9[%c0_10, %c0_11] : memref<16x64xf32, #tpu.memory_space<vmem>>, vector<16x64xf32>
      %c0_12 = arith.constant 0 : index
      %c0_13 = arith.constant 0 : index
      %13 = vector.load %arg4[%c0_12, %c0_13] : memref<1x64xf32, #tpu.memory_space<vmem>>, vector<1x64xf32>
      %14 = vector.broadcast %13 : vector<1x64xf32> to vector<16x64xf32>
      %15 = arith.addf %12, %14 : vector<16x64xf32>
      %c0_14 = arith.constant 0 : index
      %c0_15 = arith.constant 0 : index
      %16 = vector.load %arg5[%c0_14, %c0_15] : memref<16x64xbf16, #tpu.memory_space<vmem>>, vector<16x64xbf16>
      %17 = arith.extf %16 : vector<16x64xbf16> to vector<16x64xf32>
      %18 = arith.addf %15, %17 : vector<16x64xf32>
      %cst_16 = arith.constant dense<0.000000e+00> : vector<16xf32>
      %19 = vector.multi_reduction <add>, %18, %cst_16 [1] : vector<16x64xf32> to vector<16xf32>
      %20 = vector.shape_cast %19 : vector<16xf32> to vector<16x1xf32>
      %cst_17 = arith.constant 6.400000e+01 : f32
      %21 = vector.broadcast %cst_17 : f32 to vector<16x1xf32>
      %22 = arith.divf %20, %21 : vector<16x1xf32>
      %23 = vector.broadcast %22 : vector<16x1xf32> to vector<16x64xf32>
      %24 = arith.subf %18, %23 : vector<16x64xf32>
      %25 = arith.mulf %24, %24 : vector<16x64xf32>
      %cst_18 = arith.constant dense<0.000000e+00> : vector<16xf32>
      %26 = vector.multi_reduction <add>, %25, %cst_18 [1] : vector<16x64xf32> to vector<16xf32>
      %27 = vector.shape_cast %26 : vector<16xf32> to vector<16x1xf32>
      %cst_19 = arith.constant 6.400000e+01 : f32
      %28 = vector.broadcast %cst_19 : f32 to vector<16x1xf32>
      %29 = arith.divf %27, %28 : vector<16x1xf32>
      %30 = vector.broadcast %22 : vector<16x1xf32> to vector<16x64xf32>
      %31 = arith.subf %18, %30 : vector<16x64xf32>
      %cst_20 = arith.constant 9.99999996E-13 : f32
      %32 = vector.broadcast %cst_20 : f32 to vector<16x1xf32>
      %33 = arith.addf %29, %32 : vector<16x1xf32>
      %34 = math.rsqrt %33 : vector<16x1xf32>
      %35 = vector.broadcast %34 : vector<16x1xf32> to vector<16x64xf32>
      %36 = arith.mulf %31, %35 : vector<16x64xf32>
      %c0_21 = arith.constant 0 : index
      %c0_22 = arith.constant 0 : index
      %37 = vector.load %arg6[%c0_21, %c0_22] : memref<1x64xf32, #tpu.memory_space<vmem>>, vector<1x64xf32>
      %38 = vector.broadcast %37 : vector<1x64xf32> to vector<16x64xf32>
      %39 = arith.mulf %36, %38 : vector<16x64xf32>
      %c0_23 = arith.constant 0 : index
      %c0_24 = arith.constant 0 : index
      %40 = vector.load %arg7[%c0_23, %c0_24] : memref<1x64xf32, #tpu.memory_space<vmem>>, vector<1x64xf32>
      %41 = vector.broadcast %40 : vector<1x64xf32> to vector<16x64xf32>
      %42 = arith.addf %39, %41 : vector<16x64xf32>
      %43 = arith.truncf %42 : vector<16x64xf32> to vector<16x64xbf16>
      %c0_25 = arith.constant 0 : index
      %c0_26 = arith.constant 0 : index
      %44 = vector.load %arg8[%c0_25, %c0_26] : memref<16x64xbf16, #tpu.memory_space<vmem>>, vector<16x64xbf16>
      tpu.vector_store %arg8[%c0_25, %c0_26], %43 {strides = array<i32>} : memref<16x64xbf16, #tpu.memory_space<vmem>>, vector<16x64xbf16>,
    } else {
    }
    return
  }
  func.func @transform_0(%arg0: i32, %arg1: i32) -> (i32, i32) {
    %c0_i32 = arith.constant 0 : i32
    return %arg0, %arg1 : i32, i32
  }
  func.func @transform_1(%arg0: i32, %arg1: i32) -> (i32, i32) {
    %c0_i32 = arith.constant 0 : i32
    %c0_i32_0 = arith.constant 0 : i32
    return %arg1, %c0_i32 : i32, i32
  }
  func.func @transform_2(%arg0: i32, %arg1: i32) -> (i32, i32) {
    %c0_i32 = arith.constant 0 : i32
    %c0_i32_0 = arith.constant 0 : i32
    %c0_i32_1 = arith.constant 0 : i32
    return %c0_i32, %c0_i32_0 : i32, i32
  }
  func.func @transform_3(%arg0: i32, %arg1: i32) -> (i32, i32) {
    %c0_i32 = arith.constant 0 : i32
    %c0_i32_0 = arith.constant 0 : i32
    return %arg0, %c0_i32 : i32, i32
  }
  func.func @transform_4(%arg0: i32, %arg1: i32) -> (i32, i32) {
    %c0_i32 = arith.constant 0 : i32
    %c0_i32_0 = arith.constant 0 : i32
    %c0_i32_1 = arith.constant 0 : i32
    return %c0_i32, %c0_i32_0 : i32, i32
  }
  func.func @transform_5(%arg0: i32, %arg1: i32) -> (i32, i32) {
    %c0_i32 = arith.constant 0 : i32
    %c0_i32_0 = arith.constant 0 : i32
    %c0_i32_1 = arith.constant 0 : i32
    return %c0_i32, %c0_i32_0 : i32, i32
  }
  func.func @transform_6(%arg0: i32, %arg1: i32) -> (i32, i32) {
    %c0_i32 = arith.constant 0 : i32
    %c0_i32_0 = arith.constant 0 : i32
    return %arg0, %c0_i32 : i32, i32
  }
}

module attributes {stable_mosaic.version = 11 : i64} {
  func.func @dense_add_ln_kernel(%arg0: i32, %arg1: i32, %arg2: memref<16x128xbf16, #tpu.memory_space<vmem>>, %arg3: memref<128x64xbf16, #tpu.memory_space<vmem>>, %arg4: memref<1x64xf32, #tpu.memory_space<vmem>>, %arg5: memref<16x64xbf16, #tpu.memory_space<vmem>>, %arg6: memref<1x64xf32, #tpu.memory_space<vmem>>, %arg7: memref<1x64xf32, #tpu.memory_space<vmem>>, %arg8: memref<16x64xbf16, #tpu.memory_space<vmem>>, %arg9: memref<16x64xf32, #tpu.memory_space<vmem>>) attributes {dimension_semantics = [#tpu.dimension_semantics<parallel>, #tpu.dimension_semantics<arbitrary>], iteration_bounds = array<i64: 1, 1>, scalar_prefetch = 0 : i64, scratch_operands = 1 : i64, tpu.core_type = #tpu.core_type<tc>, window_params = [{transform_indices = @transform_0, window_bounds = array<i64: 16, 128>}, {transform_indices = @transform_1, window_bounds = array<i64: 128, 64>}, {pipeline_mode = #tpu.pipeline_mode<synchronous>, transform_indices = @transform_2, window_bounds = array<i64: 1, 64>}, {transform_indices = @transform_3, window_bounds = array<i64: 16, 64>}, {pipeline_mode = #tpu.pipeline_mode<synchronous>, transform_indices = @transform_4, window_bounds = array<i64: 1, 64>}, {pipeline_mode = #tpu.pipeline_mode<synchronous>, transform_indices = @transform_5, window_bounds = array<i64: 1, 64>}, {transform_indices = @transform_6, window_bounds = array<i64: 16, 64>}]} {
    %c0_i32 = arith.constant 0 : i32
    %0 = arith.cmpi eq, %arg1, %c0_i32 : i32
    %1 = arith.extui %0 : i1 to i32
    %c0_i32_0 = arith.constant 0 : i32
    %2 = arith.cmpi ne, %1, %c0_i32_0 : i32
    scf.if %2 {
      %cst_10 = arith.constant 0.000000e+00 : f32
      %12 = vector.broadcast %cst_10 : f32 to vector<16x64xf32>
      %c0_11 = arith.constant 0 : index
      %c0_12 = arith.constant 0 : index
      %13 = vector.load %arg9[%c0_11, %c0_12] : memref<16x64xf32, #tpu.memory_space<vmem>>, vector<16x64xf32>
      tpu.vector_store %arg9[%c0_11, %c0_12], %12 {strides = array<i32>} : memref<16x64xf32, #tpu.memory_space<vmem>>, vector<16x64xf32>,
    } else {
    }
    %c0 = arith.constant 0 : index
    %c0_1 = arith.constant 0 : index
    %3 = vector.load %arg9[%c0, %c0_1] : memref<16x64xf32, #tpu.memory_space<vmem>>, vector<16x64xf32>
    %c0_2 = arith.constant 0 : index
    %c0_3 = arith.constant 0 : index
    %4 = vector.load %arg2[%c0_2, %c0_3] : memref<16x128xbf16, #tpu.memory_space<vmem>>, vector<16x128xbf16>
    %c0_4 = arith.constant 0 : index
    %c0_5 = arith.constant 0 : index
    %5 = vector.load %arg3[%c0_4, %c0_5] : memref<128x64xbf16, #tpu.memory_space<vmem>>, vector<128x64xbf16>
    %cst = arith.constant dense<0.000000e+00> : vector<16x64xf32>
    %6 = tpu.matmul %4, %5, %cst {dimension_numbers = #tpu.dot_dimension_numbers<[1], [0], [0], [1], [0, 0, 1, 1], [], []>} : vector<16x128xbf16>, vector<128x64xbf16>, vector<16x64xf32> -> vector<16x64xf32>
    %7 = arith.addf %3, %6 : vector<16x64xf32>
    %c0_6 = arith.constant 0 : index
    %c0_7 = arith.constant 0 : index
    %8 = vector.load %arg9[%c0_6, %c0_7] : memref<16x64xf32, #tpu.memory_space<vmem>>, vector<16x64xf32>
    tpu.vector_store %arg9[%c0_6, %c0_7], %7 {strides = array<i32>} : memref<16x64xf32, #tpu.memory_space<vmem>>, vector<16x64xf32>,
    %c0_i32_8 = arith.constant 0 : i32
    %9 = arith.cmpi eq, %arg1, %c0_i32_8 : i32
    %10 = arith.extui %9 : i1 to i32
    %c0_i32_9 = arith.constant 0 : i32
    %11 = arith.cmpi ne, %10, %c0_i32_9 : i32
    scf.if %11 {
      %c0_10 = arith.constant 0 : index
      %c0_11 = arith.constant 0 : index
      %12 = vector.load %arg9[%c0_10, %c0_11] : memref<16x64xf32, #tpu.memory_space<vmem>>, vector<16x64xf32>
      %c0_12 = arith.constant 0 : index
      %c0_13 = arith.constant 0 : index
      %13 = vector.load %arg4[%c0_12, %c0_13] : memref<1x64xf32, #tpu.memory_space<vmem>>, vector<1x64xf32>
      %14 = vector.broadcast %13 : vector<1x64xf32> to vector<16x64xf32>
      %15 = arith.addf %12, %14 : vector<16x64xf32>
      %c0_14 = arith.constant 0 : index
      %c0_15 = arith.constant 0 : index
      %16 = vector.load %arg5[%c0_14, %c0_15] : memref<16x64xbf16, #tpu.memory_space<vmem>>, vector<16x64xbf16>
      %17 = arith.extf %16 : vector<16x64xbf16> to vector<16x64xf32>
      %18 = arith.addf %15, %17 : vector<16x64xf32>
      %cst_16 = arith.constant dense<0.000000e+00> : vector<16xf32>
      %19 = vector.multi_reduction <add>, %18, %cst_16 [1] : vector<16x64xf32> to vector<16xf32>
      %20 = vector.shape_cast %19 : vector<16xf32> to vector<16x1xf32>
      %cst_17 = arith.constant 6.400000e+01 : f32
      %21 = vector.broadcast %cst_17 : f32 to vector<16x1xf32>
      %22 = arith.divf %20, %21 : vector<16x1xf32>
      %23 = vector.broadcast %22 : vector<16x1xf32> to vector<16x64xf32>
      %24 = arith.subf %18, %23 : vector<16x64xf32>
      %25 = arith.mulf %24, %24 : vector<16x64xf32>
      %cst_18 = arith.constant dense<0.000000e+00> : vector<16xf32>
      %26 = vector.multi_reduction <add>, %25, %cst_18 [1] : vector<16x64xf32> to vector<16xf32>
      %27 = vector.shape_cast %26 : vector<16xf32> to vector<16x1xf32>
      %cst_19 = arith.constant 6.400000e+01 : f32
      %28 = vector.broadcast %cst_19 : f32 to vector<16x1xf32>
      %29 = arith.divf %27, %28 : vector<16x1xf32>
      %30 = vector.broadcast %22 : vector<16x1xf32> to vector<16x64xf32>
      %31 = arith.subf %18, %30 : vector<16x64xf32>
      %cst_20 = arith.constant 9.99999996E-13 : f32
      %32 = vector.broadcast %cst_20 : f32 to vector<16x1xf32>
      %33 = arith.addf %29, %32 : vector<16x1xf32>
      %34 = math.rsqrt %33 : vector<16x1xf32>
      %35 = vector.broadcast %34 : vector<16x1xf32> to vector<16x64xf32>
      %36 = arith.mulf %31, %35 : vector<16x64xf32>
      %c0_21 = arith.constant 0 : index
      %c0_22 = arith.constant 0 : index
      %37 = vector.load %arg6[%c0_21, %c0_22] : memref<1x64xf32, #tpu.memory_space<vmem>>, vector<1x64xf32>
      %38 = vector.broadcast %37 : vector<1x64xf32> to vector<16x64xf32>
      %39 = arith.mulf %36, %38 : vector<16x64xf32>
      %c0_23 = arith.constant 0 : index
      %c0_24 = arith.constant 0 : index
      %40 = vector.load %arg7[%c0_23, %c0_24] : memref<1x64xf32, #tpu.memory_space<vmem>>, vector<1x64xf32>
      %41 = vector.broadcast %40 : vector<1x64xf32> to vector<16x64xf32>
      %42 = arith.addf %39, %41 : vector<16x64xf32>
      %43 = arith.truncf %42 : vector<16x64xf32> to vector<16x64xbf16>
      %c0_25 = arith.constant 0 : index
      %c0_26 = arith.constant 0 : index
      %44 = vector.load %arg8[%c0_25, %c0_26] : memref<16x64xbf16, #tpu.memory_space<vmem>>, vector<16x64xbf16>
      tpu.vector_store %arg8[%c0_25, %c0_26], %43 {strides = array<i32>} : memref<16x64xbf16, #tpu.memory_space<vmem>>, vector<16x64xbf16>,
    } else {
    }
    return
  }
  func.func @transform_0(%arg0: i32, %arg1: i32) -> (i32, i32) {
    %c0_i32 = arith.constant 0 : i32
    return %arg0, %arg1 : i32, i32
  }
  func.func @transform_1(%arg0: i32, %arg1: i32) -> (i32, i32) {
    %c0_i32 = arith.constant 0 : i32
    %c0_i32_0 = arith.constant 0 : i32
    return %arg1, %c0_i32 : i32, i32
  }
  func.func @transform_2(%arg0: i32, %arg1: i32) -> (i32, i32) {
    %c0_i32 = arith.constant 0 : i32
    %c0_i32_0 = arith.constant 0 : i32
    %c0_i32_1 = arith.constant 0 : i32
    return %c0_i32, %c0_i32_0 : i32, i32
  }
  func.func @transform_3(%arg0: i32, %arg1: i32) -> (i32, i32) {
    %c0_i32 = arith.constant 0 : i32
    %c0_i32_0 = arith.constant 0 : i32
    return %arg0, %c0_i32 : i32, i32
  }
  func.func @transform_4(%arg0: i32, %arg1: i32) -> (i32, i32) {
    %c0_i32 = arith.constant 0 : i32
    %c0_i32_0 = arith.constant 0 : i32
    %c0_i32_1 = arith.constant 0 : i32
    return %c0_i32, %c0_i32_0 : i32, i32
  }
  func.func @transform_5(%arg0: i32, %arg1: i32) -> (i32, i32) {
    %c0_i32 = arith.constant 0 : i32
    %c0_i32_0 = arith.constant 0 : i32
    %c0_i32_1 = arith.constant 0 : i32
    return %c0_i32, %c0_i32_0 : i32, i32
  }
  func.func @transform_6(%arg0: i32, %arg1: i32) -> (i32, i32) {
    %c0_i32 = arith.constant 0 : i32
    %c0_i32_0 = arith.constant 0 : i32
    return %arg0, %c0_i32 : i32, i32
  }
}

module attributes {stable_mosaic.version = 11 : i64} {
  func.func @dense_kernel(%arg0: i32, %arg1: i32, %arg2: i32, %arg3: memref<16x64xbf16, #tpu.memory_space<vmem>>, %arg4: memref<64x128xbf16, #tpu.memory_space<vmem>>, %arg5: memref<1x128xf32, #tpu.memory_space<vmem>>, %arg6: memref<16x128xbf16, #tpu.memory_space<vmem>>, %arg7: memref<16x128xf32, #tpu.memory_space<vmem>>) attributes {dimension_semantics = [#tpu.dimension_semantics<parallel>, #tpu.dimension_semantics<parallel>, #tpu.dimension_semantics<arbitrary>], iteration_bounds = array<i64: 1, 1, 1>, scalar_prefetch = 0 : i64, scratch_operands = 1 : i64, tpu.core_type = #tpu.core_type<tc>, window_params = [{transform_indices = @transform_0, window_bounds = array<i64: 16, 64>}, {transform_indices = @transform_1, window_bounds = array<i64: 64, 128>}, {transform_indices = @transform_2, window_bounds = array<i64: 1, 128>}, {transform_indices = @transform_3, window_bounds = array<i64: 16, 128>}]} {
    %c0_i32 = arith.constant 0 : i32
    %0 = arith.cmpi eq, %arg2, %c0_i32 : i32
    %1 = arith.extui %0 : i1 to i32
    %c0_i32_0 = arith.constant 0 : i32
    %2 = arith.cmpi ne, %1, %c0_i32_0 : i32
    scf.if %2 {
      %cst_10 = arith.constant 0.000000e+00 : f32
      %12 = vector.broadcast %cst_10 : f32 to vector<16x128xf32>
      %c0_11 = arith.constant 0 : index
      %c0_12 = arith.constant 0 : index
      %13 = vector.load %arg7[%c0_11, %c0_12] : memref<16x128xf32, #tpu.memory_space<vmem>>, vector<16x128xf32>
      tpu.vector_store %arg7[%c0_11, %c0_12], %12 {strides = array<i32>} : memref<16x128xf32, #tpu.memory_space<vmem>>, vector<16x128xf32>,
    } else {
    }
    %c0 = arith.constant 0 : index
    %c0_1 = arith.constant 0 : index
    %3 = vector.load %arg7[%c0, %c0_1] : memref<16x128xf32, #tpu.memory_space<vmem>>, vector<16x128xf32>
    %c0_2 = arith.constant 0 : index
    %c0_3 = arith.constant 0 : index
    %4 = vector.load %arg3[%c0_2, %c0_3] : memref<16x64xbf16, #tpu.memory_space<vmem>>, vector<16x64xbf16>
    %c0_4 = arith.constant 0 : index
    %c0_5 = arith.constant 0 : index
    %5 = vector.load %arg4[%c0_4, %c0_5] : memref<64x128xbf16, #tpu.memory_space<vmem>>, vector<64x128xbf16>
    %cst = arith.constant dense<0.000000e+00> : vector<16x128xf32>
    %6 = tpu.matmul %4, %5, %cst {dimension_numbers = #tpu.dot_dimension_numbers<[1], [0], [0], [1], [0, 0, 1, 1], [], []>} : vector<16x64xbf16>, vector<64x128xbf16>, vector<16x128xf32> -> vector<16x128xf32>
    %7 = arith.addf %3, %6 : vector<16x128xf32>
    %c0_6 = arith.constant 0 : index
    %c0_7 = arith.constant 0 : index
    %8 = vector.load %arg7[%c0_6, %c0_7] : memref<16x128xf32, #tpu.memory_space<vmem>>, vector<16x128xf32>
    tpu.vector_store %arg7[%c0_6, %c0_7], %7 {strides = array<i32>} : memref<16x128xf32, #tpu.memory_space<vmem>>, vector<16x128xf32>,
    %c0_i32_8 = arith.constant 0 : i32
    %9 = arith.cmpi eq, %arg2, %c0_i32_8 : i32
    %10 = arith.extui %9 : i1 to i32
    %c0_i32_9 = arith.constant 0 : i32
    %11 = arith.cmpi ne, %10, %c0_i32_9 : i32
    scf.if %11 {
      %c0_10 = arith.constant 0 : index
      %c0_11 = arith.constant 0 : index
      %12 = vector.load %arg7[%c0_10, %c0_11] : memref<16x128xf32, #tpu.memory_space<vmem>>, vector<16x128xf32>
      %c0_12 = arith.constant 0 : index
      %c0_13 = arith.constant 0 : index
      %13 = vector.load %arg5[%c0_12, %c0_13] : memref<1x128xf32, #tpu.memory_space<vmem>>, vector<1x128xf32>
      %14 = vector.broadcast %13 : vector<1x128xf32> to vector<16x128xf32>
      %15 = arith.addf %12, %14 : vector<16x128xf32>
      %cst_14 = arith.constant 5.000000e-01 : f32
      %16 = vector.broadcast %cst_14 : f32 to vector<16x128xf32>
      %17 = arith.mulf %16, %15 : vector<16x128xf32>
      %cst_15 = arith.constant 4.471500e-02 : f32
      %18 = vector.broadcast %cst_15 : f32 to vector<16x128xf32>
      %19 = arith.mulf %18, %15 : vector<16x128xf32>
      %20 = arith.mulf %19, %15 : vector<16x128xf32>
      %21 = arith.mulf %20, %15 : vector<16x128xf32>
      %22 = arith.addf %15, %21 : vector<16x128xf32>
      %cst_16 = arith.constant 0.797884583 : f32
      %23 = vector.broadcast %cst_16 : f32 to vector<16x128xf32>
      %24 = arith.mulf %23, %22 : vector<16x128xf32>
      %25 = math.tanh %24 : vector<16x128xf32>
      %cst_17 = arith.constant 1.000000e+00 : f32
      %26 = vector.broadcast %cst_17 : f32 to vector<16x128xf32>
      %27 = arith.addf %26, %25 : vector<16x128xf32>
      %28 = arith.mulf %17, %27 : vector<16x128xf32>
      %29 = arith.truncf %28 : vector<16x128xf32> to vector<16x128xbf16>
      %c0_18 = arith.constant 0 : index
      %c0_19 = arith.constant 0 : index
      %30 = vector.load %arg6[%c0_18, %c0_19] : memref<16x128xbf16, #tpu.memory_space<vmem>>, vector<16x128xbf16>
      tpu.vector_store %arg6[%c0_18, %c0_19], %29 {strides = array<i32>} : memref<16x128xbf16, #tpu.memory_space<vmem>>, vector<16x128xbf16>,
    } else {
    }
    return
  }
  func.func @transform_0(%arg0: i32, %arg1: i32, %arg2: i32) -> (i32, i32) {
    %c0_i32 = arith.constant 0 : i32
    return %arg0, %arg2 : i32, i32
  }
  func.func @transform_1(%arg0: i32, %arg1: i32, %arg2: i32) -> (i32, i32) {
    %c0_i32 = arith.constant 0 : i32
    return %arg2, %arg1 : i32, i32
  }
  func.func @transform_2(%arg0: i32, %arg1: i32, %arg2: i32) -> (i32, i32) {
    %c0_i32 = arith.constant 0 : i32
    %c0_i32_0 = arith.constant 0 : i32
    return %c0_i32, %arg1 : i32, i32
  }
  func.func @transform_3(%arg0: i32, %arg1: i32, %arg2: i32) -> (i32, i32) {
    %c0_i32 = arith.constant 0 : i32
    return %arg0, %arg1 : i32, i32
  }
}

</mosaic_0001>

<bundles_post_ra>
// kernel: custom_bert_forward.11
= control target key start
LH: loop header
LB: loop body
LE: loop exit
PB: predicated region body
PF: predicated region fallthrough
CT: control target
= control target key end

     0   :  { %s337_s15 = smov 0   ;;  %s363_s0 = inlined_call_operand.vmem [shape: f32[16,64], index: 0, kind: input, shape index: {}]   ;;  %s364_s1 = inlined_call_operand.vmem [shape: f32[8,64], index: 1, kind: input, shape index: {}]   ;;  %s365_s2 = inlined_call_operand.vmem [shape: f32[1,64], index: 2, kind: input, shape index: {}]   ;;  %s366_s3 = inlined_call_operand.vmem [shape: f32[1,64], index: 3, kind: input, shape index: {}]   ;;  %s367_s4 = inlined_call_operand.vmem [shape: bf16[16,64], index: 4, kind: output, shape index: {}]  }
   0x1 LB: > { %s283_s16 = sadd.s32 4294967295, %s310_s15   ;;  %p287_p0 = scmp.ge.s32.totalorder %s310_s15, 1  ;;  %s310_s15 = sphi %s337_s15, %s14_s15  }
   0x2   : > { %p161_p1 = scmp.lt.s32.totalorder %s310_s15, 3 }
   0x4   : > { %p162_p2 = pnand %p287_p0, %p161_p1 }
   0x5   : > { %p185_p3 = scmp.lt.s32.totalorder (!%p162_p2), %s283_s16, 1 }
   0x6   : > { %165 = sbr.rel (%p162_p2) target bundleno = 328 (0x148), region = 36 }
   0xb   : > { %s369_s16 = smov (!%p185_p3, %s283_s16), 1  ;;  %v194_v0 = vld [vmem:[%s364_s1] sm:$0xff]  ;;  %vm196_vm0 = vcmask 523264   ;;  %vm228_vm1 = vcmask 519168  }
   0xc   : > { %s288_s17 = sshll.u32 %s369_s16, 3  ;;  %v290_v13 = vld [vmem:[%s365_s2] ss:$0 sm:$0xff]  ;;  %s289_s27 = sshll.u32 %s369_s16, 2 }
   0xd   : > { %s188_s22 = scalar_lea.vmem %s363_s0, %s288_s17  ;;  %v291_v15 = vld [vmem:[%s366_s3] ss:$0 sm:$0xff]  ;;  %s192_s30 = scalar_lea.vmem %s367_s4, %s289_s27 }
   0xe   : > { %v193_v1 = vld [vmem:[%s188_s22] sm:$0xff] }
   0xf   : > { %v195_v2 = vadd.f32 %v194_v0, %v193_v1 }
  0x11   : > { %v197_v3 = vsel %vm196_vm0, %v195_v2, 0.0 }
  0x12   : > { %198 = vadd.xlane.f32.xlu0 %v197_v3 }
  0x9b   : > { %v199_v4 = vpop.xlane.xlu0 %198 }
  0x9c   : > { %v201_v5 = vmul.f32 0.015625, %v199_v4 }
  0x9e   : > { %v202_v6 = vsub.f32 %v195_v2, %v201_v5 }
  0xa0   : > { %v203_v7 = vmul.f32 %v202_v6, %v202_v6 }
  0xa2   : > { %v204_v8 = vsel %vm196_vm0, %v203_v7, 0.0 }
  0xa3   : > { %205 = vadd.xlane.f32.xlu0 %v204_v8 }
 0x12c   : > { %v206_v9 = vpop.xlane.xlu0 %205 }
 0x12d   : > { %v207_v10 = vmul.f32 0.015625, %v206_v9 }
 0x12f   : > { %v208_v11 = vadd.f32 1e-12, %v207_v10 }
 0x131   : > { %302 = vrsqrt.f32 %v208_v11 }
 0x13e   : > { %v303_v12 = vpop.eup %302 }
 0x13f   : > { %v210_v14 = vmul.f32 %v303_v12, %v202_v6 }
 0x141   : > { %v218_v16 = vmul.f32 %v290_v13, %v210_v14 }
 0x143   : > { %v226_v17 = vadd.f32 %v291_v15, %v218_v16 }
 0x145   : > { %v227_v18 = vpack.c.bf16 %v226_v17, %v226_v17 }
 0x147   : > { %229 = vst.msk [vmem:[%s192_s30] sm:$0xf] %vm228_vm1, %v227_v18 }
 0x148 PF: > { %s14_s15 = sadd.s32 1, %s310_s15  }
 0x149   : > { %p11_p4 = scmp.ge.s32.totalorder %s14_s15, 4  }
 0x14b   :  { %13 = sbr.rel (!%p11_p4) target bundleno = 1 (0x1), region = 66 }

// kernel: custom_bert_forward.12
= control target key start
LH: loop header
LB: loop body
LE: loop exit
PB: predicated region body
PF: predicated region fallthrough
CT: control target
= control target key end

     0   :  { %vm20_vm0 = vcmask 523264   ;;  %v211_v1 = vmov 0   ;;  %v212_v2 = vmov 0.0   ;;  %v147_v11 = vlaneseq  ;;  %s274_s1 = inlined_call_operand.vmem [shape: bf16[64,192], index: 1, kind: input, shape index: {}]   ;;  %s275_s0 = inlined_call_operand.vmem [shape: bf16[16,64], index: 0, kind: input, shape index: {}]   ;;  %s276_s2 = inlined_call_operand.vmem [shape: f32[1,192], index: 2, kind: input, shape index: {}]   ;;  %s277_s3 = inlined_call_operand.vmem [shape: bf16[16,192], index: 3, kind: output, shape index: {}]  }
   0x1   :  { %v198_v0 = vld [vmem:[%s274_s1 + $0x34] ss:$8 sps:$4 sm:$0xff]   ;;  %119 = vmatprep.mubr.bf16.mxu0 %v211_v1  ;;  %21 = vst.msk [vmem:[#allocation2 + $0x8] sm:$0xff] %vm20_vm0, %v212_v2  ;;  %23 = vst.msk [vmem:[#allocation2 + $0x18] sm:$0xff] %vm20_vm0, %v212_v2  ;;  %v200_v3 = vld [vmem:[%s274_s1 + $0x30] ss:$8 sps:$4 sm:$0xff]  }
   0x2   :  { %95 = vmatprep.subr.bf16.mxu0 %v198_v0  ;;  %v201_v4 = vld [vmem:[%s274_s1 + $0x24] ss:$8 sps:$4 sm:$0xff]   ;;  %v203_v5 = vld [vmem:[%s274_s1 + $0x20] ss:$8 sps:$4 sm:$0xff]   ;;  %v204_v6 = vld [vmem:[%s274_s1 + $0x14] ss:$8 sps:$4 sm:$0xff]  }
   0x3   :  { %96 = vmatpush1.bf16.msra.mxu0 %v200_v3  ;;  %v206_v7 = vld [vmem:[%s274_s1 + $0x10] ss:$8 sps:$4 sm:$0xff]   ;;  %v207_v8 = vld [vmem:[%s274_s1 + $0x4] ss:$8 sps:$4 sm:$0xff]   ;;  %v209_v9 = vld [vmem:[%s274_s1] ss:$8 sps:$4 sm:$0xff]  }
   0x4   :  { %97 = vmatprep.subr.bf16.mxu0 %v201_v4  ;;  %v210_v10 = vld [vmem:[%s275_s0] sm:$0xff]   ;;  %v148_v14 = vshrl.u32 %v147_v11, 7  ;;  %vm173_vm1 = vcmask 1043456   ;;  %vm174_vm2 = vcmask 523268  }
   0x5   :  { %v145_v21 = vld [vmem:[%s276_s2] sm:$0x3]  ;;  %vm175_vm3 = vmor %vm174_vm2, %vm173_vm1 }
   0x6   :  { %v149_v19 = vsub.s32 0, %v148_v14  ;;  %v153_v20 = vsub.s32 1, %v148_v14 }
   0x7   :  { %98 = vmatpush1.bf16.msra.mxu0 %v203_v5 }
   0x8   :  { %99 = vmatprep.subr.bf16.mxu0 %v204_v6  ;;  %v25_v13 = vld [vmem:[#allocation2 + $0x8] sm:$0xff]  ;;  %v27_v18 = vld [vmem:[#allocation2 + $0x18] sm:$0xff]  ;;  %v150_v24 = vrot.slane %v145_v21, %v149_v19  ;;  %v154_v25 = vrot.slane %v145_v21, %v153_v20 }
   0xb   :  { %100 = vmatpush1.bf16.msra.mxu0 %v206_v7 }
   0xc   :  { %101 = vmatprep.subr.bf16.mxu0 %v207_v8 }
   0xf   :  { %102 = vmatpush1.bf16.msra.mxu0 %v209_v9 }
  0x12   :  { %191 = vmatmul.mubr.msk.bf16.vlgmr.msra.gmra.mxu0 %vm20_vm0, %v210_v10 }
  0xd2   :  { %v121_v12 = vpop.f32.mrf.mxu0 }
  0xd3   :  { %v157_v27 = vadd.f32 %v150_v24, %v121_v12 }
  0xd4   :  { %v123_v15 = vpop.f32.mrf.mxu0 }
  0xd5   :  { %v131_v16 = vadd.f32 %v123_v15, %v25_v13 }
  0xd6   :  { %v125_v17 = vpop.f32.mrf.mxu0 }
  0xd7   :  { %135 = vst.msk [vmem:[#allocation2 + $0x8] sm:$0xff] %vm20_vm0, %v131_v16  ;;  %v159_v31 = vadd.f32 %v150_v24, %v125_v17 }
  0xd8   :  { %v127_v22 = vpop.f32.mrf.mxu0 }
  0xd9   :  { %v133_v23 = vadd.f32 %v127_v22, %v27_v18 }
  0xdb   :  { %137 = vst.msk [vmem:[#allocation2 + $0x18] sm:$0xff] %vm20_vm0, %v133_v23 }
  0xde   :  { %v142_v26 = vld [vmem:[#allocation2 + $0x8] sm:$0xff] }
  0xdf   :  { %v158_v28 = vadd.f32 %v154_v25, %v142_v26 }
  0xe1   :  { %v194_v29 = vpack.c.bf16 %v158_v28, %v157_v27 }
  0xe2   :  { %v144_v30 = vld [vmem:[#allocation2 + $0x18] sm:$0xff] }
  0xe3   :  { %176 = vst.msk [vmem:[%s277_s3] sm:$0xff] %vm175_vm3, %v194_v29  ;;  %v160_v32 = vadd.f32 %v154_v25, %v144_v30 }
  0xe5   :  { %v195_v33 = vpack.c.bf16 %v160_v32, %v159_v31 }
  0xe7   :  { %177 = vst.msk [vmem:[%s277_s3 + $0x8] sm:$0xff] %vm175_vm3, %v195_v33 }

// kernel: custom_bert_forward.14
= control target key start
LH: loop header
LB: loop body
LE: loop exit
PB: predicated region body
PF: predicated region fallthrough
CT: control target
= control target key end

     0   :  { %vm28_vm0 = vcmask 523264   ;;  %v246_v0 = vmov 0.0   ;;  %vm247_vm1 = vmmov 0   ;;  %vm194_vm2 = vcmask 519168   ;;  %s325_s1 = inlined_call_operand.vmem [shape: bf16[64,64], index: 1, kind: input, shape index: {}]   ;;  %s326_s0 = inlined_call_operand.vmem [shape: bf16[16,64], index: 0, kind: input, shape index: {}]   ;;  %s327_s3 = inlined_call_operand.vmem [shape: bf16[16,64], index: 3, kind: input, shape index: {}]   ;;  %s328_s2 = inlined_call_operand.vmem [shape: f32[1,64], index: 2, kind: input, shape index: {}]   ;;  %s329_s4 = inlined_call_operand.vmem [shape: f32[1,64], index: 4, kind: input, shape index: {}]   ;;  %s330_s5 = inlined_call_operand.vmem [shape: f32[1,64], index: 5, kind: input, shape index: {}]   ;;  %s331_s6 = inlined_call_operand.vmem [shape: bf16[16,64], index: 6, kind: output, shape index: {}]  }
   0x1   :  { %223 = vmatprep.subr.bf16.mxu0 %v246_v0  ;;  %v237_v1 = vld [vmem:[%s325_s1 + $0x18] sm:$0xff]   ;;  %231 = vmatprep.mubr.msk.bf16.mxu0 %vm247_vm1, %v246_v0  ;;  %29 = vst.msk [vmem:[#allocation2] sm:$0xff] %vm28_vm0, %v246_v0  ;;  %30 = vst.msk [vmem:[#allocation2 + $0x8] sm:$0xff] %vm28_vm0, %v246_v0  ;;  %v238_v2 = vld [vmem:[%s325_s1 + $0x10] sm:$0xff]  }
   0x2   :  { %224 = vmatpush3.bf16.msra.mxu0 %v237_v1  ;;  %v239_v3 = vld [vmem:[%s325_s1 + $0x8] sm:$0xff]   ;;  %v240_v4 = vld [vmem:[%s325_s1] sm:$0xff]  }
   0x3   :  { %225 = vmatprep.subr.bf16.mxu0 %v246_v0  ;;  %v241_v5 = vld [vmem:[%s326_s0] sm:$0xff]  }
   0x4   :  { %v215_v14 = vld [vmem:[%s327_s3] sm:$0xff]  }
   0x5   :  { %v207_v15 = vld [vmem:[%s328_s2] ss:$0 sm:$0xff]  ;;  %v216_v16 = vunpack.c.l.bf16 %v215_v14  ;;  %v217_v20 = vunpack.c.h.bf16 %v215_v14 }
   0x6   :  { %226 = vmatpush3.bf16.msra.mxu0 %v238_v2  ;;  %v208_v43 = vld [vmem:[%s329_s4] ss:$0 sm:$0xff] }
   0x7   :  { %227 = vmatprep.subr.bf16.mxu0 %v246_v0  ;;  %v209_v45 = vld [vmem:[%s330_s5] ss:$0 sm:$0xff] }
   0x8   :  { %v31_v6 = vld [vmem:[#allocation2] sm:$0xff]  ;;  %v32_v10 = vld [vmem:[#allocation2 + $0x8] sm:$0xff] }
   0xa   :  { %228 = vmatpush3.bf16.msra.mxu0 %v239_v3 }
   0xb   :  { %229 = vmatprep.subr.bf16.mxu0 %v246_v0 }
   0xe   :  { %230 = vmatpush3.bf16.msra.mxu0 %v240_v4 }
  0x11   :  { %232 = vmatmul.mubr.msk.bf16.vlgmr.msra.gmra.mxu0 %vm28_vm0, %v241_v5 }
  0xd1   :  { %v110_v7 = vpop.f32.mrf.mxu0 }
  0xd2   :  { %v117_v8 = vadd.f32 %v110_v7, %v31_v6 }
  0xd3   :  { %v233_v9 = vpop.f32.mrf.mxu0 }
  0xd4   :  { %119 = vst.msk [vmem:[#allocation2] sm:$0xff] %vm28_vm0, %v117_v8 }
  0xd5   :  { %v113_v11 = vpop.f32.mrf.mxu0 }
  0xd6   :  { %v118_v12 = vadd.f32 %v113_v11, %v32_v10 }
  0xd7   :  { %v234_v13 = vpop.f32.mrf.mxu0 }
  0xd8   :  { %120 = vst.msk [vmem:[#allocation2 + $0x8] sm:$0xff] %vm28_vm0, %v118_v12 }
  0xdb   :  { %v124_v17 = vld [vmem:[#allocation2] sm:$0xff] }
  0xdc   :  { %v133_v18 = vadd.f32 %v207_v15, %v124_v17 }
  0xde   :  { %v139_v19 = vadd.f32 %v216_v16, %v133_v18 }
  0xdf   :  { %v125_v21 = vld [vmem:[#allocation2 + $0x8] sm:$0xff] }
  0xe0   :  { %v141_v22 = vsel %vm28_vm0, %v139_v19, 0.0  ;;  %v134_v23 = vadd.f32 %v207_v15, %v125_v21 }
  0xe1   :  { %142 = vadd.xlane.f32.xlu0 %v141_v22 }
  0xe2   :  { %v140_v24 = vadd.f32 %v217_v20, %v134_v23 }
  0xe4   :  { %v144_v25 = vsel %vm28_vm0, %v140_v24, 0.0 }
  0xe5   :  { %145 = vadd.xlane.f32.xlu0 %v144_v25 }
 0x16a   :  { %v143_v26 = vpop.xlane.xlu0 %142 }
 0x16b   :  { %v148_v27 = vmul.f32 0.015625, %v143_v26 }
 0x16d   :  { %v150_v28 = vsub.f32 %v139_v19, %v148_v27 }
 0x16e   :  { %v146_v29 = vpop.xlane.xlu0 %145 }
 0x16f   :  { %v149_v30 = vmul.f32 0.015625, %v146_v29  ;;  %v152_v31 = vmul.f32 %v150_v28, %v150_v28 }
 0x171   :  { %v151_v32 = vsub.f32 %v140_v24, %v149_v30  ;;  %v154_v33 = vsel %vm28_vm0, %v152_v31, 0.0 }
 0x172   :  { %155 = vadd.xlane.f32.xlu1 %v154_v33 }
 0x173   :  { %v153_v34 = vmul.f32 %v151_v32, %v151_v32 }
 0x175   :  { %v157_v35 = vsel %vm28_vm0, %v153_v34, 0.0 }
 0x176   :  { %158 = vadd.xlane.f32.xlu1 %v157_v35 }
 0x1fb   :  { %v156_v36 = vpop.xlane.xlu1 %155 }
 0x1fc   :  { %v160_v37 = vmul.f32 0.015625, %v156_v36 }
 0x1fe   :  { %v162_v38 = vadd.f32 1e-12, %v160_v37 }
 0x1ff   :  { %v159_v39 = vpop.xlane.xlu1 %158 }
 0x200   :  { %242 = vrsqrt.f32 %v162_v38  ;;  %v161_v40 = vmul.f32 0.015625, %v159_v39 }
 0x202   :  { %v163_v41 = vadd.f32 1e-12, %v161_v40 }
 0x204   :  { %244 = vrsqrt.f32 %v163_v41 }
 0x20d   :  { %v243_v42 = vpop.eup %242 }
 0x20e   :  { %v166_v44 = vmul.f32 %v243_v42, %v150_v28 }
 0x210   :  { %v175_v46 = vmul.f32 %v208_v43, %v166_v44 }
 0x211   :  { %v245_v47 = vpop.eup %244 }
 0x212   :  { %v184_v48 = vadd.f32 %v209_v45, %v175_v46  ;;  %v167_v49 = vmul.f32 %v245_v47, %v151_v32 }
 0x214   :  { %v212_v50 = vpack.c.bf16 %v184_v48, %v184_v48  ;;  %v176_v51 = vmul.f32 %v208_v43, %v167_v49 }
 0x216   :  { %195 = vst.msk [vmem:[%s331_s6] sm:$0xf] %vm194_vm2, %v212_v50  ;;  %v185_v52 = vadd.f32 %v209_v45, %v176_v51 }
 0x218   :  { %v213_v53 = vpack.c.bf16 %v185_v52, %v185_v52 }
 0x21a   :  { %196 = vst.msk [vmem:[%s331_s6 + $0x4] sm:$0xf] %vm194_vm2, %v213_v53 }

// kernel: custom_bert_forward.13
= control target key start
LH: loop header
LB: loop body
LE: loop exit
PB: predicated region body
PF: predicated region fallthrough
CT: control target
= control target key end

     0   :  { %s1062_s15 = smov 0   ;;  %s1064_s16 = smov 0   ;;  %s1189_s0 = inlined_call_operand.vmem [shape: bf16[16,192], index: 0, kind: input, shape index: {}, may-alias: {0,1,2}]   ;;  %s1190_s1 = inlined_call_operand.vmem [shape: bf16[16,192], index: 1, kind: input, shape index: {}, may-alias: {0,1,2}]   ;;  %s1191_s2 = inlined_call_operand.vmem [shape: bf16[16,192], index: 2, kind: input, shape index: {}, may-alias: {0,1,2}]   ;;  %s1192_s3 = inlined_call_operand.vmem [shape: f32[2,1,8], index: 3, kind: input, shape index: {}]   ;;  %s1193_s4 = inlined_call_operand.vmem [shape: bf16[16,64], index: 4, kind: output, shape index: {}]  }
   0x1   :  { %s1066_s17 = smov 0  }
   0x2 LB: > { %s26_s18 = sadd.s32 1, %s1022_s16  ;;  %p863_p0 = scmp.ge.s32.totalorder %s1026_s17, 1  ;;  %s1026_s17 = sphi %s1066_s17, %s14_s17   ;;  %s1022_s16 = sphi %s1064_s16, %s1195_s16   ;;  %s1018_s15 = sphi %s1062_s15, %s1194_s15  }
   0x3   : > { %p28_p1 = scmp.ge.s32.totalorder %s26_s18, 2  ;;  %p208_p2 = scmp.lt.s32.totalorder %s1026_s17, 3 }
   0x5   : > { %s1197_s18 = smov (%p28_p1, %s26_s18), 0  ;;  %p209_p3 = pnand %p863_p0, %p208_p2 }
   0x6   : > { %p249_p4 = scmp.lt.s32.totalorder (!%p209_p3), %s1018_s15, 1  ;;  %s1030_s23 = smov (!%p209_p3), 64  }
   0x7   : > { %212 = sbr.rel (%p209_p3) target bundleno = 1497 (0x5d9), region = 36  ;;  %s1031_s27 = smov (!%p209_p3), 48  }
   0x8   : > { %s1032_s5 = smov (!%p209_p3), 80   ;;  %s1033_s9 = smov (!%p209_p3), 112  }
   0x9   : > { %s1034_s10 = smov (!%p209_p3), 32   ;;  %s1035_s11 = smov (!%p209_p3), 96  }
   0xa   : > { %s1036_s12 = smov (!%p209_p3), 16  }
   0xc   : > { %v1028_v0 = vmov 0.0   ;;  %vm1029_vm0 = vmmov 0   ;;  %s1199_s15 = smov (!%p249_p4, %s1018_s15), 1  ;;  %vm284_vm1 = vcmask 130048   ;;  %vm339_vm2 = vcmask 64512  }
   0xd   : > { %904 = vmatprep.subr.bf16.mxu0 %v1028_v0  ;;  %906 = vmatprep.mubr.msk.bf16.mxu0 %vm1029_vm0, %v1028_v0  ;;  %s1089_s19 = sshll.u32 %s1199_s15, 3  ;;  %s267_s30 = scalar_lea.vmem %s1192_s3, %s1199_s15  ;;  %vm355_vm3 = vcmask 1043456   ;;  %vm754_vm4 = vcmask 261120   ;;  %vm756_vm5 = vcmask 392192   ;;  %vm759_vm6 = vcmask 519168  }
   0xe   : > { %910 = vmatprep.subr.bf16.mxu1 %v1028_v0  ;;  %912 = vmatprep.mubr.msk.bf16.mxu1 %vm1029_vm0, %v1028_v0  ;;  %s259_s22 = scalar_lea.vmem %s1190_s1, %s1089_s19  ;;  %s253_s26 = scalar_lea.vmem %s1189_s0, %s1089_s19  ;;  %v1109_v6 = vld [vmem:[%s267_s30] ss:$0 sm:$0xff] }
   0xf   : > { %v985_v1 = vld [vmem:[%s259_s22] ss:$0 sps:$4 sm:$0xff]   ;;  %s264_s8 = scalar_lea.vmem %s1191_s2, %s1089_s19  ;;  %s870_s13 = sshll.u32 %s1199_s15, 2 }
  0x10   : > { %282 = vrot.lane.b32.xlu0 %v985_v1, %s1030_s23  ;;  %v276_v4 = vld [vmem:[%s253_s26] sm:$0xf]  ;;  %404 = vrot.lane.b32.xlu1 %v985_v1, %s1031_s27  ;;  %v1119_v19 = vld [vmem:[%s264_s8 + $0x4] sm:$0xf]  ;;  %s272_s20 = scalar_lea.vmem %s1193_s4, %s870_s13 }
  0x11   : > { %v875_v13 = vcombine.low %v276_v4, %v276_v4  ;;  %v357_v20 = vsel %vm355_vm3, %v1119_v19, 0  ;;  %v877_v59 = vcombine.low %v1119_v19, %v1119_v19 }
  0x12   : > { %911 = vmatpush3.bf16.msra.mxu1 %v357_v20 }
  0x13   : > { %916 = vmatprep.subr.bf16.mxu1 %v1028_v0 }
  0x82   : > { %v283_v2 = vpop.permute.xlu0 %282  ;;  %v405_v21 = vpop.permute.xlu1 %404 }
  0x83   : > { %v289_v3 = vsel %vm284_vm1, %v283_v2, 0  ;;  %v410_v28 = vsel %vm284_vm1, %v405_v21, 0 }
  0x84   : > { %905 = vmatpush3.bf16.xpose.msra.mxu0 %v289_v3 }
  0x85   : > { %922 = vmatprep.subr.bf16.mxu0 %v1028_v0 }
  0x8b   : > { %907 = vmatmul.mubr.msk.bf16.vlgmr.msra.gmra.mxu0 %vm284_vm1, %v276_v4 }
  0x8c   : > { %924 = vmatprep.mubr.msk.bf16.mxu0 %vm1029_vm0, %v1028_v0 }
 0x14b   : > { %v325_v5 = vpop.f32.mrf.mxu0 }
 0x14c   : > { %v331_v7 = vmul.f32 0.25, %v325_v5 }
 0x14d   : > { %v908_v8 = vpop.f32.mrf.mxu0 }
 0x14e   : > { %v338_v9 = vadd.f32 %v1109_v6, %v331_v7 }
 0x14f   : > { %v328_v10 = vpop.f32.mrf.mxu0 }
 0x150   : > { %v340_v11 = vsel %vm339_vm2, %v338_v9, -inf }
 0x151   : > { %341 = vmax.xlane.f32.xlu0 %v340_v11  ;;  %v909_v12 = vpop.f32.mrf.mxu0 }
 0x167   : > { %629 = vrot.lane.b32.xlu0 %v875_v13, %s1032_s5 }
 0x1da   : > { %v342_v14 = vpop.xlane.xlu0 %341 }
 0x1db   : > { %v343_v15 = vsub.f32 %v338_v9, %v342_v14 }
 0x1dd   : > { %v344_v16 = vmul.f32 1.442695, %v343_v15 }
 0x1de   : > { %v630_v33 = vpop.permute.xlu0 %629 }
 0x1df   : > { %988 = vpow2.f32 %v344_v16 }
 0x1ec   : > { %v989_v17 = vpop.eup %988 }
 0x1ed   : > { %v346_v18 = vsel %vm339_vm2, %v989_v17, 0.0 }
 0x1ee   : > { %347 = vadd.xlane.f32.xlu1 %v346_v18 }
 0x1ff   : > { %402 = vrot.lane.b32.xlu1 %v875_v13, %s1033_s9 }
 0x203   : > { %519 = vrot.lane.b32.xlu1 %v985_v1, %s1034_s10 }
 0x207   : > { %517 = vrot.lane.b32.xlu1 %v875_v13, %s1035_s11 }
 0x20b   : > { %631 = vrot.lane.b32.xlu1 %v985_v1, %s1036_s12 }
 0x277   : > { %v348_v22 = vpop.xlane.xlu1 %347 }
 0x278   : > { %990 = vrcp.f32 %v348_v22 }
 0x27b   : > { %v403_v23 = vpop.permute.xlu1 %402 }
 0x27f   : > { %v520_v27 = vpop.permute.xlu1 %519 }
 0x280   : > { %v525_v30 = vsel %vm284_vm1, %v520_v27, 0 }
 0x283   : > { %v518_v29 = vpop.permute.xlu1 %517 }
 0x285   : > { %v991_v24 = vpop.eup %990 }
 0x286   : > { %v350_v25 = vmul.f32 %v991_v24, %v989_v17 }
 0x287   : > { %v632_v31 = vpop.permute.xlu1 %631 }
 0x288   : > { %v351_v26 = vpack.c.bf16 %v350_v25, %v350_v25  ;;  %v637_v32 = vsel %vm284_vm1, %v632_v31, 0 }
 0x28a   : > { %913 = vmatmul.mubr.msk.bf16.vlgmr.msra.gmra.mxu1 %vm339_vm2, %v351_v26 }
 0x28b   : > { %917 = vmatpush3.bf16.xpose.msra.mxu1 %v410_v28  ;;  %918 = vmatprep.mubr.msk.bf16.mxu1 %vm1029_vm0, %v1028_v0 }
 0x28c   : > { %928 = vmatprep.subr.bf16.mxu1 %v1028_v0 }
 0x292   : > { %919 = vmatmul.mubr.msk.bf16.vlgmr.msra.gmra.mxu1 %vm284_vm1, %v403_v23 }
 0x293   : > { %929 = vmatpush3.bf16.xpose.msra.mxu1 %v525_v30  ;;  %930 = vmatprep.mubr.msk.bf16.mxu1 %vm1029_vm0, %v1028_v0 }
 0x294   : > { %940 = vmatprep.subr.bf16.mxu1 %v1028_v0 }
 0x29a   : > { %931 = vmatmul.mubr.msk.bf16.vlgmr.msra.gmra.mxu1 %vm284_vm1, %v518_v29 }
 0x29b   : > { %941 = vmatpush3.bf16.xpose.msra.mxu1 %v637_v32  ;;  %942 = vmatprep.mubr.msk.bf16.mxu1 %vm1029_vm0, %v1028_v0 }
 0x2a2   : > { %943 = vmatmul.mubr.msk.bf16.vlgmr.msra.gmra.mxu1 %vm284_vm1, %v630_v33 }
 0x34a   : > { %v1143_v34 = vpop.f32.mrf.mxu1 }
 0x34c   : > { %v914_v35 = vpop.f32.mrf.mxu1 }
 0x34e   : > { %v396_v36 = vpop.f32.mrf.mxu1 }
 0x350   : > { %v915_v37 = vpop.f32.mrf.mxu1 }
 0x352   : > { %v446_v38 = vpop.f32.mrf.mxu1 }
 0x353   : > { %v452_v39 = vmul.f32 0.25, %v446_v38 }
 0x354   : > { %v920_v40 = vpop.f32.mrf.mxu1 }
 0x355   : > { %v453_v41 = vadd.f32 %v1109_v6, %v452_v39 }
 0x356   : > { %v449_v42 = vpop.f32.mrf.mxu1 }
 0x357   : > { %v454_v43 = vsel %vm339_vm2, %v453_v41, -inf }
 0x358   : > { %455 = vmax.xlane.f32.xlu1 %v454_v43  ;;  %v921_v44 = vpop.f32.mrf.mxu1 }
 0x35a   : > { %v561_v45 = vpop.f32.mrf.mxu1 }
 0x35b   : > { %v567_v46 = vmul.f32 0.25, %v561_v45 }
 0x35c   : > { %v932_v47 = vpop.f32.mrf.mxu1 }
 0x35d   : > { %v568_v48 = vadd.f32 %v1109_v6, %v567_v46 }
 0x35e   : > { %v564_v49 = vpop.f32.mrf.mxu1 }
 0x35f   : > { %v569_v50 = vsel %vm339_vm2, %v568_v48, -inf }
 0x360   : > { %570 = vmax.xlane.f32.xlu0 %v569_v50  ;;  %v933_v51 = vpop.f32.mrf.mxu1 }
 0x362   : > { %v673_v52 = vpop.f32.mrf.mxu1 }
 0x363   : > { %v679_v53 = vmul.f32 0.25, %v673_v52 }
 0x364   : > { %v944_v54 = vpop.f32.mrf.mxu1 }
 0x365   : > { %v680_v55 = vadd.f32 %v1109_v6, %v679_v53 }
 0x366   : > { %v676_v56 = vpop.f32.mrf.mxu1 }
 0x367   : > { %v681_v57 = vsel %vm339_vm2, %v680_v55, -inf }
 0x368   : > { %682 = vmax.xlane.f32.xlu1 %v681_v57  ;;  %v945_v58 = vpop.f32.mrf.mxu1 }
 0x376   : > { %469 = vrot.lane.b32.xlu0 %v877_v59, %s1033_s9 }
 0x379   : > { %581 = vrot.lane.b32.xlu1 %v877_v59, %s1035_s11 }
 0x3e1   : > { %v456_v60 = vpop.xlane.xlu1 %455 }
 0x3e2   : > { %v457_v61 = vsub.f32 %v453_v41, %v456_v60 }
 0x3e4   : > { %v458_v62 = vmul.f32 1.442695, %v457_v61 }
 0x3e6   : > { %992 = vpow2.f32 %v458_v62 }
 0x3e9   : > { %v571_v63 = vpop.xlane.xlu0 %570 }
 0x3ea   : > { %v572_v1 = vsub.f32 %v568_v48, %v571_v63 }
 0x3ec   : > { %v573_v2 = vmul.f32 1.442695, %v572_v1 }
 0x3ed   : > { %v470_v12 = vpop.permute.xlu0 %469 }
 0x3ee   : > { %994 = vpow2.f32 %v573_v2  ;;  %v475_v13 = vsel %vm355_vm3, %v470_v12, 0 }
 0x3ef   : > { %923 = vmatpush3.bf16.msra.mxu0 %v475_v13 }
 0x3f0   : > { %934 = vmatprep.subr.bf16.mxu0 %v1028_v0 }
 0x3f1   : > { %v683_v3 = vpop.xlane.xlu1 %682 }
 0x3f2   : > { %v684_v4 = vsub.f32 %v680_v55, %v683_v3 }
 0x3f3   : > { %v993_v5 = vpop.eup %992 }
 0x3f4   : > { %v685_v6 = vmul.f32 1.442695, %v684_v4  ;;  %v460_v7 = vsel %vm339_vm2, %v993_v5, 0.0 }
 0x3f5   : > { %461 = vadd.xlane.f32.xlu1 %v460_v7  ;;  %v582_v14 = vpop.permute.xlu1 %581 }
 0x3f6   : > { %996 = vpow2.f32 %v685_v6  ;;  %v587_v21 = vsel %vm355_vm3, %v582_v14, 0 }
 0x3fb   : > { %v995_v8 = vpop.eup %994 }
 0x3fc   : > { %v575_v9 = vsel %vm339_vm2, %v995_v8, 0.0 }
 0x3fd   : > { %576 = vadd.xlane.f32.xlu1 %v575_v9 }
 0x403   : > { %v997_v10 = vpop.eup %996 }
 0x404   : > { %v687_v11 = vsel %vm339_vm2, %v997_v10, 0.0 }
 0x405   : > { %688 = vadd.xlane.f32.xlu1 %v687_v11 }
 0x416   : > { %693 = vrot.lane.b32.xlu1 %v877_v59, %s1032_s5 }
 0x47e   : > { %v462_v15 = vpop.xlane.xlu1 %461 }
 0x47f   : > { %998 = vrcp.f32 %v462_v15 }
 0x486   : > { %v577_v16 = vpop.xlane.xlu1 %576 }
 0x487   : > { %1000 = vrcp.f32 %v577_v16 }
 0x48c   : > { %v999_v17 = vpop.eup %998 }
 0x48d   : > { %v464_v18 = vmul.f32 %v999_v17, %v993_v5 }
 0x48e   : > { %v689_v19 = vpop.xlane.xlu1 %688 }
 0x48f   : > { %1002 = vrcp.f32 %v689_v19  ;;  %v465_v20 = vpack.c.bf16 %v464_v18, %v464_v18 }
 0x491   : > { %925 = vmatmul.mubr.msk.bf16.vlgmr.msra.gmra.mxu0 %vm339_vm2, %v465_v20 }
 0x492   : > { %935 = vmatpush3.bf16.msra.mxu0 %v587_v21  ;;  %936 = vmatprep.mubr.msk.bf16.mxu0 %vm1029_vm0, %v1028_v0  ;;  %v694_v23 = vpop.permute.xlu1 %693 }
 0x493   : > { %946 = vmatprep.subr.bf16.mxu0 %v1028_v0  ;;  %v699_v25 = vsel %vm355_vm3, %v694_v23, 0 }
 0x494   : > { %v1001_v22 = vpop.eup %1000 }
 0x495   : > { %v579_v24 = vmul.f32 %v1001_v22, %v995_v8 }
 0x497   : > { %v580_v26 = vpack.c.bf16 %v579_v24, %v579_v24 }
 0x499   : > { %937 = vmatmul.mubr.msk.bf16.vlgmr.msra.gmra.mxu0 %vm339_vm2, %v580_v26 }
 0x49a   : > { %947 = vmatpush3.bf16.msra.mxu0 %v699_v25  ;;  %948 = vmatprep.mubr.msk.bf16.mxu0 %vm1029_vm0, %v1028_v0 }
 0x49c   : > { %v1003_v27 = vpop.eup %1002 }
 0x49d   : > { %v691_v28 = vmul.f32 %v1003_v27, %v997_v10 }
 0x49f   : > { %v692_v29 = vpack.c.bf16 %v691_v28, %v691_v28 }
 0x4a1   : > { %949 = vmatmul.mubr.msk.bf16.vlgmr.msra.gmra.mxu0 %vm339_vm2, %v692_v29 }
 0x551   : > { %v511_v30 = vpop.f32.mrf.mxu0 }
 0x552   : > { %742 = vrot.lane.b32.xlu0 %v511_v30, %s1036_s12 }
 0x553   : > { %v926_v31 = vpop.f32.mrf.mxu0 }
 0x555   : > { %v514_v32 = vpop.f32.mrf.mxu0 }
 0x557   : > { %v927_v33 = vpop.f32.mrf.mxu0 }
 0x559   : > { %v623_v35 = vpop.f32.mrf.mxu0 }
 0x55a   : > { %746 = vrot.lane.b32.xlu1 %v623_v35, %s1034_s10 }
 0x55b   : > { %v938_v36 = vpop.f32.mrf.mxu0 }
 0x55d   : > { %v626_v37 = vpop.f32.mrf.mxu0 }
 0x55f   : > { %v939_v38 = vpop.f32.mrf.mxu0 }
 0x561   : > { %v735_v39 = vpop.f32.mrf.mxu0 }
 0x562   : > { %750 = vrot.lane.b32.xlu0 %v735_v39, %s1031_s27 }
 0x563   : > { %v950_v0 = vpop.f32.mrf.mxu0 }
 0x565   : > { %v738_v40 = vpop.f32.mrf.mxu0 }
 0x567   : > { %v951_v41 = vpop.f32.mrf.mxu0 }
 0x5c4   : > { %v743_v42 = vpop.permute.xlu0 %742 }
 0x5c5   : > { %v753_v44 = vsel %vm284_vm1, %v1143_v34, %v743_v42 }
 0x5cc   : > { %v747_v43 = vpop.permute.xlu1 %746 }
 0x5cd   : > { %v755_v45 = vsel %vm754_vm4, %v753_v44, %v747_v43 }
 0x5d4   : > { %v751_v46 = vpop.permute.xlu0 %750 }
 0x5d5   : > { %v757_v47 = vsel %vm756_vm5, %v755_v45, %v751_v46 }
 0x5d6   : > { %v758_v48 = vpack.c.bf16 %v757_v47, %v757_v47 }
 0x5d8   : > { %760 = vst.msk [vmem:[%s272_s20] sm:$0xf] %vm759_vm6, %v758_v48 }
 0x5d9 PF: > { %s14_s17 = sadd.s32 1, %s1026_s17   ;;  %s1194_s15 = smov %s1022_s16 }
 0x5da   : > { %p11_p5 = scmp.ge.s32.totalorder %s14_s17, 4   ;;  %s1195_s16 = smov %s1197_s18 }
 0x5dc   :  { %13 = sbr.rel (!%p11_p5) target bundleno = 2 (0x2), region = 75 }

// kernel: custom_bert_forward.16
= control target key start
LH: loop header
LB: loop body
LE: loop exit
PB: predicated region body
PF: predicated region fallthrough
CT: control target
= control target key end

     0   :  { %vm28_vm0 = vcmask 523264   ;;  %v295_v0 = vmov 0.0   ;;  %vm296_vm1 = vmmov 0   ;;  %vm224_vm2 = vcmask 519168   ;;  %s385_s1 = inlined_call_operand.vmem [shape: bf16[128,64], index: 1, kind: input, shape index: {}]   ;;  %s386_s0 = inlined_call_operand.vmem [shape: bf16[16,128], index: 0, kind: input, shape index: {}]   ;;  %s387_s3 = inlined_call_operand.vmem [shape: bf16[16,64], index: 3, kind: input, shape index: {}]   ;;  %s388_s2 = inlined_call_operand.vmem [shape: f32[1,64], index: 2, kind: input, shape index: {}]   ;;  %s389_s4 = inlined_call_operand.vmem [shape: f32[1,64], index: 4, kind: input, shape index: {}]   ;;  %s390_s5 = inlined_call_operand.vmem [shape: f32[1,64], index: 5, kind: input, shape index: {}]   ;;  %s391_s6 = inlined_call_operand.vmem [shape: bf16[16,64], index: 6, kind: output, shape index: {}]  }
   0x1   :  { %260 = vmatprep.subr.bf16.mxu0 %v295_v0  ;;  %v282_v1 = vld [vmem:[%s385_s1 + $0x38] sm:$0xff]   ;;  %276 = vmatprep.mubr.msk.bf16.mxu0 %vm296_vm1, %v295_v0  ;;  %29 = vst.msk [vmem:[#allocation2] sm:$0xff] %vm28_vm0, %v295_v0  ;;  %30 = vst.msk [vmem:[#allocation2 + $0x8] sm:$0xff] %vm28_vm0, %v295_v0  ;;  %v283_v2 = vld [vmem:[%s385_s1 + $0x30] sm:$0xff]  }
   0x2   :  { %261 = vmatpush3.bf16.msra.mxu0 %v282_v1  ;;  %v284_v3 = vld [vmem:[%s385_s1 + $0x28] sm:$0xff]   ;;  %v285_v4 = vld [vmem:[%s385_s1 + $0x20] sm:$0xff]   ;;  %v286_v5 = vld [vmem:[%s385_s1 + $0x18] sm:$0xff]  }
   0x3   :  { %262 = vmatprep.subr.bf16.mxu0 %v295_v0  ;;  %v287_v6 = vld [vmem:[%s385_s1 + $0x10] sm:$0xff]   ;;  %v288_v7 = vld [vmem:[%s385_s1 + $0x8] sm:$0xff]   ;;  %v289_v8 = vld [vmem:[%s385_s1] sm:$0xff]  }
   0x4   :  { %v290_v9 = vld [vmem:[%s386_s0] sm:$0xff]  }
   0x5   :  { %v248_v18 = vld [vmem:[%s387_s3] sm:$0xff]  }
   0x6   :  { %263 = vmatpush3.bf16.msra.mxu0 %v283_v2  ;;  %v240_v19 = vld [vmem:[%s388_s2] ss:$0 sm:$0xff]  ;;  %v249_v20 = vunpack.c.l.bf16 %v248_v18  ;;  %v250_v24 = vunpack.c.h.bf16 %v248_v18 }
   0x7   :  { %264 = vmatprep.subr.bf16.mxu0 %v295_v0  ;;  %v241_v47 = vld [vmem:[%s389_s4] ss:$0 sm:$0xff] }
   0x8   :  { %v31_v10 = vld [vmem:[#allocation2] sm:$0xff]  ;;  %v32_v14 = vld [vmem:[#allocation2 + $0x8] sm:$0xff] }
   0x9   :  { %v242_v49 = vld [vmem:[%s390_s5] ss:$0 sm:$0xff] }
   0xa   :  { %265 = vmatpush3.bf16.msra.mxu0 %v284_v3 }
   0xb   :  { %266 = vmatprep.subr.bf16.mxu0 %v295_v0 }
   0xe   :  { %267 = vmatpush3.bf16.msra.mxu0 %v285_v4 }
   0xf   :  { %268 = vmatprep.subr.bf16.mxu0 %v295_v0 }
  0x12   :  { %269 = vmatpush3.bf16.msra.mxu0 %v286_v5 }
  0x13   :  { %270 = vmatprep.subr.bf16.mxu0 %v295_v0 }
  0x16   :  { %271 = vmatpush3.bf16.msra.mxu0 %v287_v6 }
  0x17   :  { %272 = vmatprep.subr.bf16.mxu0 %v295_v0 }
  0x1a   :  { %273 = vmatpush3.bf16.msra.mxu0 %v288_v7 }
  0x1b   :  { %274 = vmatprep.subr.bf16.mxu0 %v295_v0 }
  0x1e   :  { %275 = vmatpush3.bf16.msra.mxu0 %v289_v8 }
  0x21   :  { %277 = vmatmul.mubr.bf16.vlgmr.msra.gmra.mxu0 %v290_v9 }
  0xe1   :  { %v139_v11 = vpop.f32.mrf.mxu0 }
  0xe2   :  { %v146_v12 = vadd.f32 %v139_v11, %v31_v10 }
  0xe3   :  { %v278_v13 = vpop.f32.mrf.mxu0 }
  0xe4   :  { %149 = vst.msk [vmem:[#allocation2] sm:$0xff] %vm28_vm0, %v146_v12 }
  0xe5   :  { %v142_v15 = vpop.f32.mrf.mxu0 }
  0xe6   :  { %v147_v16 = vadd.f32 %v142_v15, %v32_v14 }
  0xe7   :  { %v279_v17 = vpop.f32.mrf.mxu0 }
  0xe8   :  { %150 = vst.msk [vmem:[#allocation2 + $0x8] sm:$0xff] %vm28_vm0, %v147_v16 }
  0xeb   :  { %v154_v21 = vld [vmem:[#allocation2] sm:$0xff] }
  0xec   :  { %v163_v22 = vadd.f32 %v240_v19, %v154_v21 }
  0xee   :  { %v169_v23 = vadd.f32 %v249_v20, %v163_v22 }
  0xef   :  { %v155_v25 = vld [vmem:[#allocation2 + $0x8] sm:$0xff] }
  0xf0   :  { %v171_v26 = vsel %vm28_vm0, %v169_v23, 0.0  ;;  %v164_v27 = vadd.f32 %v240_v19, %v155_v25 }
  0xf1   :  { %172 = vadd.xlane.f32.xlu0 %v171_v26 }
  0xf2   :  { %v170_v28 = vadd.f32 %v250_v24, %v164_v27 }
  0xf4   :  { %v174_v29 = vsel %vm28_vm0, %v170_v28, 0.0 }
  0xf5   :  { %175 = vadd.xlane.f32.xlu0 %v174_v29 }
 0x17a   :  { %v173_v30 = vpop.xlane.xlu0 %172 }
 0x17b   :  { %v178_v31 = vmul.f32 0.015625, %v173_v30 }
 0x17d   :  { %v180_v32 = vsub.f32 %v169_v23, %v178_v31 }
 0x17e   :  { %v176_v33 = vpop.xlane.xlu0 %175 }
 0x17f   :  { %v179_v34 = vmul.f32 0.015625, %v176_v33  ;;  %v182_v35 = vmul.f32 %v180_v32, %v180_v32 }
 0x181   :  { %v181_v36 = vsub.f32 %v170_v28, %v179_v34  ;;  %v184_v37 = vsel %vm28_vm0, %v182_v35, 0.0 }
 0x182   :  { %185 = vadd.xlane.f32.xlu1 %v184_v37 }
 0x183   :  { %v183_v38 = vmul.f32 %v181_v36, %v181_v36 }
 0x185   :  { %v187_v39 = vsel %vm28_vm0, %v183_v38, 0.0 }
 0x186   :  { %188 = vadd.xlane.f32.xlu1 %v187_v39 }
 0x20b   :  { %v186_v40 = vpop.xlane.xlu1 %185 }
 0x20c   :  { %v190_v41 = vmul.f32 0.015625, %v186_v40 }
 0x20e   :  { %v192_v42 = vadd.f32 1e-12, %v190_v41 }
 0x20f   :  { %v189_v43 = vpop.xlane.xlu1 %188 }
 0x210   :  { %291 = vrsqrt.f32 %v192_v42  ;;  %v191_v44 = vmul.f32 0.015625, %v189_v43 }
 0x212   :  { %v193_v45 = vadd.f32 1e-12, %v191_v44 }
 0x214   :  { %293 = vrsqrt.f32 %v193_v45 }
 0x21d   :  { %v292_v46 = vpop.eup %291 }
 0x21e   :  { %v196_v48 = vmul.f32 %v292_v46, %v180_v32 }
 0x220   :  { %v205_v50 = vmul.f32 %v241_v47, %v196_v48 }
 0x221   :  { %v294_v51 = vpop.eup %293 }
 0x222   :  { %v214_v52 = vadd.f32 %v242_v49, %v205_v50  ;;  %v197_v53 = vmul.f32 %v294_v51, %v181_v36 }
 0x224   :  { %v245_v54 = vpack.c.bf16 %v214_v52, %v214_v52  ;;  %v206_v55 = vmul.f32 %v241_v47, %v197_v53 }
 0x226   :  { %225 = vst.msk [vmem:[%s391_s6] sm:$0xf] %vm224_vm2, %v245_v54  ;;  %v215_v56 = vadd.f32 %v242_v49, %v206_v55 }
 0x228   :  { %v246_v57 = vpack.c.bf16 %v215_v56, %v215_v56 }
 0x22a   :  { %226 = vst.msk [vmem:[%s391_s6 + $0x4] sm:$0xf] %vm224_vm2, %v246_v57 }

// kernel: custom_bert_forward.15
= control target key start
LH: loop header
LB: loop body
LE: loop exit
PB: predicated region body
PF: predicated region fallthrough
CT: control target
= control target key end

     0   :  { %v201_v0 = vmov 0.0   ;;  %vm202_vm0 = vmmov 0   ;;  %vm62_vm1 = vcmask 523264   ;;  %s244_s1 = inlined_call_operand.vmem [shape: bf16[64,128], index: 1, kind: input, shape index: {}]   ;;  %s245_s0 = inlined_call_operand.vmem [shape: bf16[16,64], index: 0, kind: input, shape index: {}]   ;;  %s246_s2 = inlined_call_operand.vmem [shape: f32[1,128], index: 2, kind: input, shape index: {}]   ;;  %s247_s3 = inlined_call_operand.vmem [shape: bf16[16,128], index: 3, kind: output, shape index: {}]  }
   0x1   :  { %178 = vmatprep.subr.bf16.mxu0 %v201_v0  ;;  %v192_v1 = vld [vmem:[%s244_s1 + $0x18] sm:$0xff]   ;;  %186 = vmatprep.mubr.msk.bf16.mxu0 %vm202_vm0, %v201_v0  ;;  %v193_v2 = vld [vmem:[%s244_s1 + $0x10] sm:$0xff]   ;;  %v194_v3 = vld [vmem:[%s244_s1 + $0x8] sm:$0xff]  }
   0x2   :  { %179 = vmatpush3.bf16.msra.mxu0 %v192_v1  ;;  %v195_v4 = vld [vmem:[%s244_s1] sm:$0xff]  }
   0x3   :  { %180 = vmatprep.subr.bf16.mxu0 %v201_v0  ;;  %v196_v5 = vld [vmem:[%s245_s0] sm:$0xff]  }
   0x4   :  { %v163_v6 = vld [vmem:[%s246_s2] ss:$0 sm:$0xff] }
   0x6   :  { %181 = vmatpush3.bf16.msra.mxu0 %v193_v2 }
   0x7   :  { %182 = vmatprep.subr.bf16.mxu0 %v201_v0 }
   0xa   :  { %183 = vmatpush3.bf16.msra.mxu0 %v194_v3 }
   0xb   :  { %184 = vmatprep.subr.bf16.mxu0 %v201_v0 }
   0xe   :  { %185 = vmatpush3.bf16.msra.mxu0 %v195_v4 }
  0x11   :  { %187 = vmatmul.mubr.msk.bf16.vlgmr.msra.gmra.mxu0 %vm62_vm1, %v196_v5 }
  0xd1   :  { %v100_v7 = vpop.f32.mrf.mxu0 }
  0xd2   :  { %v123_v8 = vadd.f32 %v163_v6, %v100_v7 }
  0xd3   :  { %v188_v9 = vpop.f32.mrf.mxu0 }
  0xd4   :  { %v127_v10 = vmul.f32 0.044715, %v123_v8  ;;  %v125_v26 = vmul.f32 0.5, %v123_v8 }
  0xd5   :  { %v103_v11 = vpop.f32.mrf.mxu0 }
  0xd6   :  { %v129_v12 = vmul.f32 %v127_v10, %v123_v8  ;;  %v124_v13 = vadd.f32 %v163_v6, %v103_v11 }
  0xd7   :  { %v189_v14 = vpop.f32.mrf.mxu0 }
  0xd8   :  { %v131_v15 = vmul.f32 %v129_v12, %v123_v8  ;;  %v128_v16 = vmul.f32 0.044715, %v124_v13  ;;  %v126_v27 = vmul.f32 0.5, %v124_v13 }
  0xda   :  { %v133_v17 = vadd.f32 %v131_v15, %v123_v8  ;;  %v130_v18 = vmul.f32 %v128_v16, %v124_v13 }
  0xdc   :  { %v135_v19 = vmul.f32 0.7978846, %v133_v17  ;;  %v132_v20 = vmul.f32 %v130_v18, %v124_v13 }
  0xde   :  { %197 = vtanh.f32 %v135_v19  ;;  %v134_v21 = vadd.f32 %v132_v20, %v124_v13 }
  0xe0   :  { %v136_v22 = vmul.f32 0.7978846, %v134_v21 }
  0xe2   :  { %199 = vtanh.f32 %v136_v22 }
  0xeb   :  { %v198_v23 = vpop.eup %197 }
  0xec   :  { %v139_v24 = vadd.f32 1.0, %v198_v23 }
  0xee   :  { %v141_v29 = vmul.f32 %v139_v24, %v125_v26 }
  0xef   :  { %v200_v25 = vpop.eup %199 }
  0xf0   :  { %v140_v28 = vadd.f32 1.0, %v200_v25 }
  0xf2   :  { %v142_v30 = vmul.f32 %v140_v28, %v126_v27 }
  0xf4   :  { %v171_v31 = vpack.c.bf16 %v142_v30, %v141_v29 }
  0xf6   :  { %172 = vst [vmem:[%s247_s3] sm:$0xff] %v171_v31  }

</bundles_post_ra>
